<compile_context>
chip_gen: v7x
topology: tpu7x:2x2x1
jax: 0.10.0
libtpu: 0.0.40
codegen_flags: <defaults>
</compile_context>

<pallas_src>
import functools

import numpy as np

import jax
import jax.numpy as jnp
from jax.experimental import pallas as pl
from jax.experimental.pallas import tpu as pltpu

_EPS = 1e-8  # matches torch cosine_similarity eps (clamped per-norm, like torch)


def _round_up(x, m):
    return ((x + m - 1) // m) * m


def _sim_loss_kernel(fake_ref, real_ref,
                     start_c_ref, end_c_ref, meanw_c_ref,
                     start_r_ref, end_r_ref, lossw_r_ref,
                     out_ref, *, global_col, eps):
    """Single-shot kernel: all segments + global term in one pass.

    fake/real:      (Np, Dp)  f32, zero-padded
    start/end/meanw (col): (Kp, 1)  -- drive the (Kp, Np) mean-weight mask
    start/end/lossw (row): (1, Kp)  -- drive the (Np, Kp) loss-weight mask
    out:            (1, 1)   f32 scalar in SMEM
    """
    fake = fake_ref[...]
    real = real_ref[...]
    np_, dp = fake.shape
    kp = start_c_ref.shape[0]

    # ---- weighted membership masks built on the VPU from iota (no HBM masks) ----
    # (Kp, Np): row k holds 1/n_k inside [a_k, b_k) (row `global_col` = 1/N over
    # all real rows), so `mask @ vals` directly yields segment means.
    col_ids = jax.lax.broadcasted_iota(jnp.int32, (kp, np_), 1)
    in_seg_kn = (col_ids >= start_c_ref[...]) & (col_ids < end_c_ref[...])
    mw_kn = jnp.where(in_seg_kn, meanw_c_ref[...], 0.0)

    # (Np, Kp): per-row loss weights with 1/(n_k * 2K) folded in; the global
    # column and all padding are zero, so they drop out of the segment sum.
    row_ids = jax.lax.broadcasted_iota(jnp.int32, (np_, kp), 0)
    in_seg_nk = (row_ids >= start_r_ref[...]) & (row_ids < end_r_ref[...])
    lw_nk = jnp.where(in_seg_nk, lossw_r_ref[...], 0.0)

    # ---- segment (and global) means on the MXU: (Kp, Dp) ----
    hi = jax.lax.Precision.HIGHEST
    mu_f = jnp.dot(mw_kn, fake, precision=hi, preferred_element_type=jnp.float32)
    mu_r = jnp.dot(mw_kn, real, precision=hi, preferred_element_type=jnp.float32)

    # ---- normalize mean vectors (per-norm eps clamp, torch semantics) ----
    mn_f = jnp.sqrt(jnp.sum(mu_f * mu_f, axis=1, keepdims=True))      # (Kp, 1)
    mn_r = jnp.sqrt(jnp.sum(mu_r * mu_r, axis=1, keepdims=True))
    mu_f_hat = mu_f / jnp.maximum(mn_f, eps)
    mu_r_hat = mu_r / jnp.maximum(mn_r, eps)

    # ---- per-row norms, computed exactly once ----
    rn_f = jnp.sqrt(jnp.sum(fake * fake, axis=1, keepdims=True))      # (Np, 1)
    rn_r = jnp.sqrt(jnp.sum(real * real, axis=1, keepdims=True))
    inv_rn_f = 1.0 / jnp.maximum(rn_f, eps)
    inv_rn_r = 1.0 / jnp.maximum(rn_r, eps)

    # ---- row-vs-segment-mean cosines on the MXU: (Np, Kp) ----
    dn = (((1,), (1,)), ((), ()))   # contract the feature (lane) dim of both
    cos_a = jax.lax.dot_general(real, mu_f_hat, dn, precision=hi,
                                preferred_element_type=jnp.float32) * inv_rn_r
    cos_b = jax.lax.dot_general(fake, mu_r_hat, dn, precision=hi,
                                preferred_element_type=jnp.float32) * inv_rn_f

    # ---- segment loss: sum_k (1/2K) * [ mean_i(1-cos_a) + mean_i(1-cos_b) ] ----
    seg_loss = jnp.sum(lw_nk * ((1.0 - cos_a) + (1.0 - cos_b)))

    # ---- global l_ab from the dedicated "all rows" column (already normalized) ----
    gf = mu_f_hat[global_col:global_col + 1, :]                       # (1, Dp)
    gr = mu_r_hat[global_col:global_col + 1, :]
    cos_ab = jnp.sum(gf * gr)

    out_ref[0, 0] = (seg_loss + (1.0 - cos_ab)) * 0.5


def sim_forward_loss(label_cuts, fake_vals, real_vals):
    """Pallas implementation of SimForwardLoss.forward (reduction='mean', target=+1)."""
    K = len(label_cuts)
    N, D = fake_vals.shape
    Np = _round_up(max(N, 8), 8)          # sublane-aligned
    Dp = _round_up(max(D, 128), 128)      # lane-dense feature dim
    Kp = _round_up(K + 1, 128)            # +1 column carries the global means
    global_col = K

    fake_p = jnp.zeros((Np, Dp), jnp.float32).at[:N, :D].set(
        fake_vals.astype(jnp.float32))
    real_p = jnp.zeros((Np, Dp), jnp.float32).at[:N, :D].set(
        real_vals.astype(jnp.float32))

    starts = np.zeros((Kp,), np.int32)
    ends = np.zeros((Kp,), np.int32)
    meanw = np.zeros((Kp,), np.float32)
    lossw = np.zeros((Kp,), np.float32)
    for k, (a, b) in enumerate(label_cuts):
        if not (0 <= a < b <= N):
            raise ValueError(f"degenerate/invalid cut ({a}, {b}) for N={N}")
        starts[k], ends[k] = a, b
        meanw[k] = 1.0 / (b - a)
        lossw[k] = 1.0 / ((b - a) * 2 * K)
    # Extra column: global means over all N rows (excluded from the segment loss).
    starts[global_col], ends[global_col] = 0, N
    meanw[global_col] = 1.0 / N

    col = lambda v: jnp.asarray(v).reshape(Kp, 1)
    row = lambda v: jnp.asarray(v).reshape(1, Kp)

    kernel = functools.partial(_sim_loss_kernel, global_col=global_col, eps=_EPS)
    out = pl.pallas_call(
        kernel,
        out_shape=jax.ShapeDtypeStruct((1, 1), jnp.float32),
        in_specs=[pl.BlockSpec(memory_space=pltpu.MemorySpace.VMEM)] * 8,
        out_specs=pl.BlockSpec(memory_space=pltpu.MemorySpace.SMEM),
    )(fake_p, real_p,
      col(starts), col(ends), col(meanw),
      row(starts), row(ends), row(lossw))
    return out[0, 0]


def _reference_loss(label_cuts, fake_vals, real_vals):
    """Pure-JAX reference mirroring the PyTorch forward."""
    def cos(x, y):
        nx = jnp.maximum(jnp.sqrt(jnp.sum(x * x, axis=-1)), _EPS)
        ny = jnp.maximum(jnp.sqrt(jnp.sum(y * y, axis=-1)), _EPS)
        return jnp.sum(x * y, axis=-1) / (nx * ny)

    losses = []
    for a, b in label_cuts:
        f = fake_vals[a:b]
        r = real_vals[a:b]
        losses.append(jnp.mean(1.0 - cos(f.mean(0, keepdims=True), r)))
        losses.append(jnp.mean(1.0 - cos(r.mean(0, keepdims=True), f)))
    seg = sum(losses) / len(losses)
    l_ab = 1.0 - cos(fake_vals.mean(0, keepdims=True),
                     real_vals.mean(0, keepdims=True))[0]
    return (seg + l_ab) / 2.0


if __name__ == "__main__":
    key = jax.random.PRNGKey(0)
    k1, k2 = jax.random.split(key)

    N, D = 8, 32
    label_cuts = [(0, 3), (3, 5), (5, 8)]
    fake_vals = jax.random.normal(k1, (N, D), dtype=jnp.float32)
    real_vals = jax.random.normal(k2, (N, D), dtype=jnp.float32)

    loss = sim_forward_loss(label_cuts, fake_vals, real_vals)
    loss = jax.block_until_ready(loss)

    ref = _reference_loss(label_cuts, fake_vals, real_vals)
    assert jnp.abs(loss - ref) < 1e-4, (loss, ref)

    print("KERNEL_OK")
</pallas_src>

<mosaic_0001>
module attributes {stable_mosaic.version = 11 : i64} {
  func.func @_sim_loss_kernel(%arg0: memref<8x128xf32, #tpu.memory_space<vmem>>, %arg1: memref<8x128xf32, #tpu.memory_space<vmem>>, %arg2: memref<128x1xi32, #tpu.memory_space<vmem>>, %arg3: memref<128x1xi32, #tpu.memory_space<vmem>>, %arg4: memref<128x1xf32, #tpu.memory_space<vmem>>, %arg5: memref<1x128xi32, #tpu.memory_space<vmem>>, %arg6: memref<1x128xi32, #tpu.memory_space<vmem>>, %arg7: memref<1x128xf32, #tpu.memory_space<vmem>>, %arg8: memref<1x1xf32, #tpu.memory_space<smem>>) attributes {dimension_semantics = [], scalar_prefetch = 0 : i64, scratch_operands = 0 : i64, tpu.core_type = #tpu.core_type<tc>} {
    %c0 = arith.constant 0 : index
    %c0_0 = arith.constant 0 : index
    %0 = vector.load %arg0[%c0, %c0_0] : memref<8x128xf32, #tpu.memory_space<vmem>>, vector<8x128xf32>
    %c0_1 = arith.constant 0 : index
    %c0_2 = arith.constant 0 : index
    %1 = vector.load %arg1[%c0_1, %c0_2] : memref<8x128xf32, #tpu.memory_space<vmem>>, vector<8x128xf32>
    %2 = tpu.iota {dimensions = array<i32: 1>} : vector<128x8xi32>
    %c0_3 = arith.constant 0 : index
    %c0_4 = arith.constant 0 : index
    %3 = vector.load %arg2[%c0_3, %c0_4] : memref<128x1xi32, #tpu.memory_space<vmem>>, vector<128x1xi32>
    %4 = vector.broadcast %3 : vector<128x1xi32> to vector<128x8xi32>
    %5 = arith.cmpi sge, %2, %4 : vector<128x8xi32>
    %c0_5 = arith.constant 0 : index
    %c0_6 = arith.constant 0 : index
    %6 = vector.load %arg3[%c0_5, %c0_6] : memref<128x1xi32, #tpu.memory_space<vmem>>, vector<128x1xi32>
    %7 = vector.broadcast %6 : vector<128x1xi32> to vector<128x8xi32>
    %8 = arith.cmpi slt, %2, %7 : vector<128x8xi32>
    %9 = arith.andi %5, %8 : vector<128x8xi1>
    %c0_7 = arith.constant 0 : index
    %c0_8 = arith.constant 0 : index
    %10 = vector.load %arg4[%c0_7, %c0_8] : memref<128x1xf32, #tpu.memory_space<vmem>>, vector<128x1xf32>
    %cst = arith.constant 0.000000e+00 : f32
    %11 = vector.shape_cast %10 : vector<128x1xf32> to vector<128x1xf32>
    %12 = vector.broadcast %11 : vector<128x1xf32> to vector<128x8xf32>
    %13 = vector.broadcast %cst : f32 to vector<128x8xf32>
    %14 = arith.select %9, %12, %13 : vector<128x8xi1>, vector<128x8xf32>
    %15 = tpu.iota {dimensions = array<i32: 0>} : vector<8x128xi32>
    %c0_9 = arith.constant 0 : index
    %c0_10 = arith.constant 0 : index
    %16 = vector.load %arg5[%c0_9, %c0_10] : memref<1x128xi32, #tpu.memory_space<vmem>>, vector<1x128xi32>
    %17 = vector.broadcast %16 : vector<1x128xi32> to vector<8x128xi32>
    %18 = arith.cmpi sge, %15, %17 : vector<8x128xi32>
    %c0_11 = arith.constant 0 : index
    %c0_12 = arith.constant 0 : index
    %19 = vector.load %arg6[%c0_11, %c0_12] : memref<1x128xi32, #tpu.memory_space<vmem>>, vector<1x128xi32>
    %20 = vector.broadcast %19 : vector<1x128xi32> to vector<8x128xi32>
    %21 = arith.cmpi slt, %15, %20 : vector<8x128xi32>
    %22 = arith.andi %18, %21 : vector<8x128xi1>
    %c0_13 = arith.constant 0 : index
    %c0_14 = arith.constant 0 : index
    %23 = vector.load %arg7[%c0_13, %c0_14] : memref<1x128xf32, #tpu.memory_space<vmem>>, vector<1x128xf32>
    %cst_15 = arith.constant 0.000000e+00 : f32
    %24 = vector.shape_cast %23 : vector<1x128xf32> to vector<1x128xf32>
    %25 = vector.broadcast %24 : vector<1x128xf32> to vector<8x128xf32>
    %26 = vector.broadcast %cst_15 : f32 to vector<8x128xf32>
    %27 = arith.select %22, %25, %26 : vector<8x128xi1>, vector<8x128xf32>
    %cst_16 = arith.constant dense<0.000000e+00> : vector<128x128xf32>
    %28 = tpu.matmul %14, %0, %cst_16 {dimension_numbers = #tpu.dot_dimension_numbers<[1], [0], [0], [1], [0, 0, 1, 1], [], []>, precision = #tpu.contract_precision<fp32>} : vector<128x8xf32>, vector<8x128xf32>, vector<128x128xf32> -> vector<128x128xf32>
    %cst_17 = arith.constant dense<0.000000e+00> : vector<128x128xf32>
    %29 = tpu.matmul %14, %1, %cst_17 {dimension_numbers = #tpu.dot_dimension_numbers<[1], [0], [0], [1], [0, 0, 1, 1], [], []>, precision = #tpu.contract_precision<fp32>} : vector<128x8xf32>, vector<8x128xf32>, vector<128x128xf32> -> vector<128x128xf32>
    %30 = arith.mulf %28, %28 : vector<128x128xf32>
    %cst_18 = arith.constant dense<0.000000e+00> : vector<128xf32>
    %31 = vector.multi_reduction <add>, %30, %cst_18 [1] : vector<128x128xf32> to vector<128xf32>
    %32 = vector.shape_cast %31 : vector<128xf32> to vector<128x1xf32>
    %33 = math.sqrt %32 : vector<128x1xf32>
    %34 = arith.mulf %29, %29 : vector<128x128xf32>
    %cst_19 = arith.constant dense<0.000000e+00> : vector<128xf32>
    %35 = vector.multi_reduction <add>, %34, %cst_19 [1] : vector<128x128xf32> to vector<128xf32>
    %36 = vector.shape_cast %35 : vector<128xf32> to vector<128x1xf32>
    %37 = math.sqrt %36 : vector<128x1xf32>
    %cst_20 = arith.constant 9.99999993E-9 : f32
    %38 = vector.broadcast %cst_20 : f32 to vector<128x1xf32>
    %39 = arith.maximumf %33, %38 : vector<128x1xf32>
    %40 = vector.broadcast %39 : vector<128x1xf32> to vector<128x128xf32>
    %41 = arith.divf %28, %40 : vector<128x128xf32>
    %cst_21 = arith.constant 9.99999993E-9 : f32
    %42 = vector.broadcast %cst_21 : f32 to vector<128x1xf32>
    %43 = arith.maximumf %37, %42 : vector<128x1xf32>
    %44 = vector.broadcast %43 : vector<128x1xf32> to vector<128x128xf32>
    %45 = arith.divf %29, %44 : vector<128x128xf32>
    %46 = arith.mulf %0, %0 : vector<8x128xf32>
    %cst_22 = arith.constant dense<0.000000e+00> : vector<8xf32>
    %47 = vector.multi_reduction <add>, %46, %cst_22 [1] : vector<8x128xf32> to vector<8xf32>
    %48 = vector.shape_cast %47 : vector<8xf32> to vector<8x1xf32>
    %49 = math.sqrt %48 : vector<8x1xf32>
    %50 = arith.mulf %1, %1 : vector<8x128xf32>
    %cst_23 = arith.constant dense<0.000000e+00> : vector<8xf32>
    %51 = vector.multi_reduction <add>, %50, %cst_23 [1] : vector<8x128xf32> to vector<8xf32>
    %52 = vector.shape_cast %51 : vector<8xf32> to vector<8x1xf32>
    %53 = math.sqrt %52 : vector<8x1xf32>
    %cst_24 = arith.constant 9.99999993E-9 : f32
    %54 = vector.broadcast %cst_24 : f32 to vector<8x1xf32>
    %55 = arith.maximumf %49, %54 : vector<8x1xf32>
    %cst_25 = arith.constant 1.000000e+00 : f32
    %56 = vector.broadcast %cst_25 : f32 to vector<8x1xf32>
    %57 = arith.divf %56, %55 : vector<8x1xf32>
    %cst_26 = arith.constant 9.99999993E-9 : f32
    %58 = vector.broadcast %cst_26 : f32 to vector<8x1xf32>
    %59 = arith.maximumf %53, %58 : vector<8x1xf32>
    %cst_27 = arith.constant 1.000000e+00 : f32
    %60 = vector.broadcast %cst_27 : f32 to vector<8x1xf32>
    %61 = arith.divf %60, %59 : vector<8x1xf32>
    %cst_28 = arith.constant dense<0.000000e+00> : vector<8x128xf32>
    %62 = tpu.matmul %1, %41, %cst_28 {dimension_numbers = #tpu.dot_dimension_numbers<[1], [1], [0], [0], [0, 0, 1, 0], [], []>, precision = #tpu.contract_precision<fp32>} : vector<8x128xf32>, vector<128x128xf32>, vector<8x128xf32> -> vector<8x128xf32>
    %63 = vector.broadcast %61 : vector<8x1xf32> to vector<8x128xf32>
    %64 = arith.mulf %62, %63 : vector<8x128xf32>
    %cst_29 = arith.constant dense<0.000000e+00> : vector<8x128xf32>
    %65 = tpu.matmul %0, %45, %cst_29 {dimension_numbers = #tpu.dot_dimension_numbers<[1], [1], [0], [0], [0, 0, 1, 0], [], []>, precision = #tpu.contract_precision<fp32>} : vector<8x128xf32>, vector<128x128xf32>, vector<8x128xf32> -> vector<8x128xf32>
    %66 = vector.broadcast %57 : vector<8x1xf32> to vector<8x128xf32>
    %67 = arith.mulf %65, %66 : vector<8x128xf32>
    %cst_30 = arith.constant 1.000000e+00 : f32
    %68 = vector.broadcast %cst_30 : f32 to vector<8x128xf32>
    %69 = arith.subf %68, %64 : vector<8x128xf32>
    %cst_31 = arith.constant 1.000000e+00 : f32
    %70 = vector.broadcast %cst_31 : f32 to vector<8x128xf32>
    %71 = arith.subf %70, %67 : vector<8x128xf32>
    %72 = arith.addf %69, %71 : vector<8x128xf32>
    %73 = arith.mulf %27, %72 : vector<8x128xf32>
    %74 = vector.shape_cast %73 : vector<8x128xf32> to vector<1x8x128xf32>
    %cst_32 = arith.constant dense<0.000000e+00> : vector<1xf32>
    %75 = vector.multi_reduction <add>, %74, %cst_32 [1, 2] : vector<1x8x128xf32> to vector<1xf32>
    %76 = vector.shape_cast %75 : vector<1xf32> to vector<1x1x1xf32>
    %77 = vector.extract %76[0, 0, 0] : f32 from vector<1x1x1xf32>
    %78 = vector.extract_strided_slice %41 {offsets = [3, 0], sizes = [1, 128], strides = [1, 1]} : vector<128x128xf32> to vector<1x128xf32>
    %79 = vector.extract_strided_slice %45 {offsets = [3, 0], sizes = [1, 128], strides = [1, 1]} : vector<128x128xf32> to vector<1x128xf32>
    %80 = arith.mulf %78, %79 : vector<1x128xf32>
    %81 = vector.shape_cast %80 : vector<1x128xf32> to vector<1x1x128xf32>
    %cst_33 = arith.constant dense<0.000000e+00> : vector<1xf32>
    %82 = vector.multi_reduction <add>, %81, %cst_33 [1, 2] : vector<1x1x128xf32> to vector<1xf32>
    %83 = vector.shape_cast %82 : vector<1xf32> to vector<1x1x1xf32>
    %84 = vector.extract %83[0, 0, 0] : f32 from vector<1x1x1xf32>
    %cst_34 = arith.constant 1.000000e+00 : f32
    %85 = arith.subf %cst_34, %84 : f32
    %86 = arith.addf %77, %85 : f32
    %cst_35 = arith.constant 5.000000e-01 : f32
    %87 = arith.mulf %86, %cst_35 : f32
    %c0_36 = arith.constant 0 : index
    %c0_37 = arith.constant 0 : index
    %88 = memref.load %arg8[%c0_36, %c0_37] : memref<1x1xf32, #tpu.memory_space<smem>>
    memref.store %87, %arg8[%c0_36, %c0_37] : memref<1x1xf32, #tpu.memory_space<smem>>
    return
  }
}

</mosaic_0001>

<bundles_post_ra>
// kernel: tpu_custom_call.1
= control target key start
LH: loop header
LB: loop body
LE: loop exit
PB: predicated region body
PF: predicated region fallthrough
CT: control target
= control target key end

     0   :  { %v6120_v2 = vmov 0   ;;  %s7978_s0 = inlined_call_operand.vmem [shape: f32[8,128], index: 0, kind: input, shape index: {}]   ;;  %s7979_s1 = inlined_call_operand.vmem [shape: f32[8,128], index: 1, kind: input, shape index: {}]   ;;  %s7980_s2 = inlined_call_operand.vmem [shape: s32[128,1], index: 2, kind: input, shape index: {}]   ;;  %s7981_s3 = inlined_call_operand.vmem [shape: s32[128,1], index: 3, kind: input, shape index: {}]   ;;  %s7982_s4 = inlined_call_operand.vmem [shape: f32[128,1], index: 4, kind: input, shape index: {}]   ;;  %s7983_s5 = inlined_call_operand.vmem [shape: s32[1,128], index: 5, kind: input, shape index: {}]   ;;  %s7984_s6 = inlined_call_operand.vmem [shape: s32[1,128], index: 6, kind: input, shape index: {}]   ;;  %s7985_s7 = inlined_call_operand.vmem [shape: f32[1,128], index: 7, kind: input, shape index: {}]   ;;  %s7986_s8 = inlined_call_operand.hbm [shape: f32[1,1], index: 8, kind: output, shape index: {}]  }
   0x1   :  { %v35_v0 = vld [vmem:[%s7980_s2 + $0x8] sm:$0xff]  ;;  %v34_v1 = vld [vmem:[%s7980_s2] sm:$0xff]  ;;  %5969 = vset.pattern.permute.xlu1 %v6120_v2  ;;  %5968 = vset.pattern.permute.xlu0 %v6120_v2  ;;  %v116_v7 = vld [vmem:[%s7981_s3 + $0x10] sm:$0xff] }
   0x2   :  { %54 = vperm.xlu1 %5969, %v35_v0   ;;  %51 = vperm.xlu0 %5968, %v34_v1   ;;  %v115_v3 = vld [vmem:[%s7981_s3 + $0x8] sm:$0xff]  ;;  %v114_v4 = vld [vmem:[%s7981_s3] sm:$0xff]  ;;  %v36_v8 = vld [vmem:[%s7980_s2 + $0x10] sm:$0xff] }
   0x3   :  { %v211_v5 = vld [vmem:[%s7982_s4 + $0x8] sm:$0xff]  ;;  %v210_v6 = vld [vmem:[%s7982_s4] sm:$0xff]  ;;  %v117_v9 = vld [vmem:[%s7981_s3 + $0x18] sm:$0xff] }
   0x4   :  { %v37_v10 = vld [vmem:[%s7980_s2 + $0x18] sm:$0xff] }
   0x6   :  { %134 = vperm.xlu1 %5969, %v115_v3   ;;  %131 = vperm.xlu0 %5968, %v114_v4  }
   0xa   :  { %233 = vperm.xlu1 %5969, %v211_v5   ;;  %228 = vperm.xlu0 %5968, %v210_v6  }
   0xe   :  { %137 = vperm.xlu1 %5969, %v116_v7   ;;  %57 = vperm.xlu0 %5968, %v36_v8  }
   0xf   :  { %13 = vsyncpa [#allocation3], 0  ;;  %v213_v11 = vld [vmem:[%s7982_s4 + $0x18] sm:$0xff]  ;;  %v212_v12 = vld [vmem:[%s7982_s4 + $0x10] sm:$0xff]  ;;  %v7987_v61 = vlaneseq  ;;  %vm345_vm4 = vcmask 64512   ;;  %s6108_s26 = scalar_lea.hbm %s7986_s8, 16 }
  0x10   :  { %v6209_v13 = vld [vmem:[%s7978_s0] sm:$0xff]  ;;  %v119_v19 = vld [vmem:[%s7981_s3 + $0x28] sm:$0xff]  ;;  %v120_v23 = vld [vmem:[%s7981_s3 + $0x30] sm:$0xff]  ;;  %p6109_p0 = scmp.ne.s32.totalorder %s7986_s8, %s6108_s26  ;;  %p6112_p1 = scmp.lt.u32.totalorder %s6108_s26, %s7986_s8 }
  0x11   :  { %v6214_v14 = vld [vmem:[%s7979_s1] sm:$0xff]  ;;  %v6217_v15 = vand.u32 4294901760, %v6209_v13  ;;  %v39_v20 = vld [vmem:[%s7980_s2 + $0x28] sm:$0xff]  ;;  %v40_v24 = vld [vmem:[%s7980_s2 + $0x30] sm:$0xff]  ;;  %v6359_v0 = vand.u32 127, %v7987_v61 }
  0x12   :  { %140 = vperm.xlu1 %5969, %v117_v9   ;;  %60 = vperm.xlu0 %5968, %v37_v10   ;;  %v6220_v16 = vand.u32 4294901760, %v6214_v14  ;;  %v118_v17 = vld [vmem:[%s7981_s3 + $0x20] sm:$0xff]  ;;  %v215_v21 = vld [vmem:[%s7982_s4 + $0x28] sm:$0xff]  ;;  %v121_v25 = vld [vmem:[%s7981_s3 + $0x38] sm:$0xff]  ;;  %p6114_p2 = pnand %p6112_p1, %p6109_p0 }
  0x13   :  { %8067 = vst [vmem:[#allocation5_spill] sm:$0xff] %v6217_v15  ;;  %v38_v18 = vld [vmem:[%s7980_s2 + $0x20] sm:$0xff]  ;;  %4759 = vmatprep.subr.mxu0 %v6217_v15  ;;  %v41_v26 = vld [vmem:[%s7980_s2 + $0x38] sm:$0xff]  ;;  %v216_v28 = vld [vmem:[%s7982_s4 + $0x30] sm:$0xff]  ;;  %v6335_v53 = vsub.f32 %v6209_v13, %v6217_v15 }
  0x14   :  { %8068 = vst [vmem:[#allocation6_spill] sm:$0xff] %v6220_v16  ;;  %4915 = vmatprep.subr.mxu1 %v6220_v16  ;;  %4760 = vmatpush3.msra.mxu0 %v6217_v15  ;;  %v214_v22 = vld [vmem:[%s7982_s4 + $0x20] sm:$0xff]  ;;  %v217_v27 = vld [vmem:[%s7982_s4 + $0x38] sm:$0xff]  ;;  %v123_v31 = vld [vmem:[%s7981_s3 + $0x48] sm:$0xff]  ;;  %v6312_v45 = vsub.f32 %v6214_v14, %v6220_v16 }
  0x15   :  { %4916 = vmatpush3.msra.mxu1 %v6220_v16  ;;  %v122_v29 = vld [vmem:[%s7981_s3 + $0x40] sm:$0xff]  ;;  %v43_v32 = vld [vmem:[%s7980_s2 + $0x48] sm:$0xff]  ;;  %v124_v35 = vld [vmem:[%s7981_s3 + $0x50] sm:$0xff]  ;;  %8072 = vst [vmem:[#allocation10_spill] sm:$0xff] %v6335_v53  ;;  %v6345_v56 = vand.u32 4294901760, %v6335_v53 }
  0x16   :  { %243 = vperm.xlu1 %5969, %v213_v11   ;;  %238 = vperm.xlu0 %5968, %v212_v12   ;;  %v42_v30 = vld [vmem:[%s7980_s2 + $0x40] sm:$0xff]  ;;  %v219_v33 = vld [vmem:[%s7982_s4 + $0x48] sm:$0xff]  ;;  %v44_v36 = vld [vmem:[%s7980_s2 + $0x50] sm:$0xff]  ;;  %8069 = vst [vmem:[#allocation7_spill] sm:$0xff] %v6312_v45  ;;  %v6321_v48 = vand.u32 4294901760, %v6312_v45 }
  0x17   :  { %v218_v34 = vld [vmem:[%s7982_s4 + $0x40] sm:$0xff]  ;;  %v125_v37 = vld [vmem:[%s7981_s3 + $0x58] sm:$0xff]  ;;  %v220_v40 = vld [vmem:[%s7982_s4 + $0x50] sm:$0xff]  ;;  %8073 = vst [vmem:[#allocation11_spill] sm:$0xff] %v6345_v56  ;;  %v624_v57 = vsub.f32 %v6335_v53, %v6345_v56 }
  0x18   :  { %v45_v38 = vld [vmem:[%s7980_s2 + $0x58] sm:$0xff]  ;;  %v126_v41 = vld [vmem:[%s7981_s3 + $0x60] sm:$0xff]  ;;  %v127_v43 = vld [vmem:[%s7981_s3 + $0x68] sm:$0xff]  ;;  %8070 = vst [vmem:[#allocation8_spill] sm:$0xff] %v6321_v48  ;;  %v1715_v49 = vsub.f32 %v6312_v45, %v6321_v48 }
  0x19   :  { %v221_v39 = vld [vmem:[%s7982_s4 + $0x58] sm:$0xff]  ;;  %v46_v42 = vld [vmem:[%s7980_s2 + $0x60] sm:$0xff]  ;;  %v47_v44 = vld [vmem:[%s7980_s2 + $0x68] sm:$0xff]  ;;  %v6355_v60 = vand.u32 4294901760, %v624_v57 }
  0x1a   :  { %143 = vperm.xlu1 %5969, %v118_v17   ;;  %63 = vperm.xlu0 %5968, %v38_v18   ;;  %v223_v46 = vld [vmem:[%s7982_s4 + $0x68] sm:$0xff]  ;;  %v222_v47 = vld [vmem:[%s7982_s4 + $0x60] sm:$0xff]  ;;  %v128_v50 = vld [vmem:[%s7981_s3 + $0x70] sm:$0xff]  ;;  %v6331_v52 = vand.u32 4294901760, %v1715_v49 }
  0x1b   :  { %v48_v51 = vld [vmem:[%s7980_s2 + $0x70] sm:$0xff]  ;;  %v129_v54 = vld [vmem:[%s7981_s3 + $0x78] sm:$0xff]  ;;  %8074 = vst [vmem:[#allocation12_spill] sm:$0xff] %v6355_v60  ;;  %4785 = vmatprep.subr.mxu0 %v6355_v60 }
  0x1c   :  { %8071 = vst [vmem:[#allocation9_spill] sm:$0xff] %v6331_v52  ;;  %v49_v55 = vld [vmem:[%s7980_s2 + $0x78] sm:$0xff]  ;;  %4941 = vmatprep.subr.mxu1 %v6331_v52  ;;  %v224_v59 = vld [vmem:[%s7982_s4 + $0x70] sm:$0xff] }
  0x1d   :  { %v225_v58 = vld [vmem:[%s7982_s4 + $0x78] sm:$0xff] }
  0x1e   :  { %146 = vperm.xlu1 %5969, %v119_v19   ;;  %66 = vperm.xlu0 %5968, %v39_v20  }
  0x22   :  { %253 = vperm.xlu1 %5969, %v215_v21   ;;  %248 = vperm.xlu0 %5968, %v214_v22  }
  0x26   :  { %149 = vperm.xlu1 %5969, %v120_v23   ;;  %69 = vperm.xlu0 %5968, %v40_v24  }
  0x2a   :  { %152 = vperm.xlu1 %5969, %v121_v25   ;;  %72 = vperm.xlu0 %5968, %v41_v26  }
  0x2e   :  { %263 = vperm.xlu1 %5969, %v217_v27   ;;  %258 = vperm.xlu0 %5968, %v216_v28  }
  0x32   :  { %155 = vperm.xlu1 %5969, %v122_v29   ;;  %75 = vperm.xlu0 %5968, %v42_v30  }
  0x36   :  { %158 = vperm.xlu1 %5969, %v123_v31   ;;  %78 = vperm.xlu0 %5968, %v43_v32  }
  0x3a   :  { %273 = vperm.xlu1 %5969, %v219_v33   ;;  %268 = vperm.xlu0 %5968, %v218_v34  }
  0x3e   :  { %161 = vperm.xlu1 %5969, %v124_v35   ;;  %81 = vperm.xlu0 %5968, %v44_v36  }
  0x42   :  { %164 = vperm.xlu1 %5969, %v125_v37   ;;  %84 = vperm.xlu0 %5968, %v45_v38  }
  0x46   :  { %283 = vperm.xlu1 %5969, %v221_v39   ;;  %278 = vperm.xlu0 %5968, %v220_v40  }
  0x4a   :  { %167 = vperm.xlu1 %5969, %v126_v41   ;;  %87 = vperm.xlu0 %5968, %v46_v42  }
  0x4e   :  { %170 = vperm.xlu1 %5969, %v127_v43   ;;  %90 = vperm.xlu0 %5968, %v47_v44  }
  0x52   :  { %293 = vperm.xlu1 %5969, %v223_v46   ;;  %288 = vperm.xlu0 %5968, %v222_v47  }
  0x56   :  { %173 = vperm.xlu1 %5969, %v128_v50   ;;  %93 = vperm.xlu0 %5968, %v48_v51  }
  0x5a   :  { %176 = vperm.xlu1 %5969, %v129_v54   ;;  %96 = vperm.xlu0 %5968, %v49_v55  }
  0x5e   :  { %303 = vperm.xlu1 %5969, %v225_v58   ;;  %298 = vperm.xlu0 %5968, %v224_v59  }
  0x81   :  { %v55_v62 = vpop.permute.xlu1 %54  ;;  %v52_v63 = vpop.permute.xlu0 %51 }
  0x82   :  { %vm99_vm2 = vcmp.ge.s32.totalorder %v6359_v0, %v55_v62  ;;  %vm98_vm3 = vcmp.ge.s32.totalorder %v6359_v0, %v52_v63 }
  0x85   :  { %v135_v1 = vpop.permute.xlu1 %134  ;;  %v132_v2 = vpop.permute.xlu0 %131 }
  0x86   :  { %vm179_vm0 = vcmp.lt.s32.totalorder %v6359_v0, %v135_v1  ;;  %vm178_vm1 = vcmp.lt.s32.totalorder %v6359_v0, %v132_v2 }
  0x87   :  { %vm195_vm5 = vmand %vm99_vm2, %vm179_vm0 }
  0x88   :  { %vm194_vm6 = vmand %vm98_vm3, %vm178_vm1 }
  0x89   :  { %v234_v3 = vpop.permute.xlu1 %233  ;;  %v229_v4 = vpop.permute.xlu0 %228 }
  0x8a   :  { %v307_v5 = vsel %vm195_vm5, %v234_v3, 0.0  ;;  %v306_v6 = vsel %vm194_vm6, %v229_v4, 0.0 }
  0x8b   :  { %v350_v7 = vsel %vm345_vm4, %v307_v5, 0  ;;  %v347_v8 = vsel %vm345_vm4, %v306_v6, 0 }
  0x8c   :  { %v6367_v9 = vand.u32 4294901760, %v350_v7  ;;  %v6369_v10 = vand.u32 4294901760, %v347_v8 }
  0x8d   :  { %v138_v11 = vpop.permute.xlu1 %137  ;;  %v58_v12 = vpop.permute.xlu0 %57 }
  0x8e   :  { %v6372_v13 = vsub.f32 %v350_v7, %v6367_v9  ;;  %v6375_v14 = vsub.f32 %v347_v8, %v6369_v10  ;;  %vm180_vm7 = vcmp.lt.s32.totalorder %v6359_v0, %v138_v11  ;;  %vm100_vm8 = vcmp.ge.s32.totalorder %v6359_v0, %v58_v12 }
  0x8f   :  { %vm196_vm11 = vmand %vm100_vm8, %vm180_vm7 }
  0x90   :  { %v6378_v17 = vand.u32 4294901760, %v6375_v14  ;;  %v6381_v18 = vand.u32 4294901760, %v6372_v13 }
  0x91   :  { %v141_v19 = vpop.permute.xlu1 %140  ;;  %v61_v20 = vpop.permute.xlu0 %60 }
  0x92   :  { %vm181_vm9 = vcmp.lt.s32.totalorder %v6359_v0, %v141_v19  ;;  %vm101_vm10 = vcmp.ge.s32.totalorder %v6359_v0, %v61_v20  ;;  %v463_v21 = vsub.f32 %v6375_v14, %v6378_v17  ;;  %v473_v22 = vsub.f32 %v6372_v13, %v6381_v18 }
  0x93   :  { %vm197_vm12 = vmand %vm101_vm10, %vm181_vm9 }
  0x94   :  { %v464_v23 = vand.u32 4294901760, %v463_v21  ;;  %v474_v24 = vand.u32 4294901760, %v473_v22 }
  0x95   :  { %v244_v25 = vpop.permute.xlu1 %243  ;;  %v239_v26 = vpop.permute.xlu0 %238 }
  0x96   :  { %v309_v27 = vsel %vm197_vm12, %v244_v25, 0.0  ;;  %v308_v28 = vsel %vm196_vm11, %v239_v26, 0.0  ;;  %4761 = vmatprep.mubr.f32.mxu0 %v464_v23  ;;  %4917 = vmatprep.mubr.f32.mxu1 %v464_v23 }
  0x97   :  { %v356_v29 = vsel %vm345_vm4, %v309_v27, 0  ;;  %v353_v30 = vsel %vm345_vm4, %v308_v28, 0  ;;  %4762 = vmatmul.mubr.f32.vlgmr.msra.gmra.mrb[0].mxu0 %v474_v24  ;;  %4918 = vmatmul.mubr.f32.vlgmr.msra.gmra.mrb[0].mxu1 %v474_v24 }
  0x98   :  { %v6393_v31 = vand.u32 4294901760, %v356_v29  ;;  %v6395_v32 = vand.u32 4294901760, %v353_v30  ;;  %4942 = vmatpush3.msra.mxu1 %v6331_v52  ;;  %4786 = vmatpush3.msra.mxu0 %v6355_v60 }
  0x99   :  { %v144_v33 = vpop.permute.xlu1 %143  ;;  %v64_v34 = vpop.permute.xlu0 %63  ;;  %4967 = vmatprep.subr.mxu1 %v6312_v45  ;;  %4811 = vmatprep.subr.mxu0 %v6335_v53 }
  0x9a   :  { %v6402_v35 = vsub.f32 %v356_v29, %v6393_v31  ;;  %v6405_v36 = vsub.f32 %v353_v30, %v6395_v32  ;;  %vm182_vm13 = vcmp.lt.s32.totalorder %v6359_v0, %v144_v33  ;;  %vm102_vm14 = vcmp.ge.s32.totalorder %v6359_v0, %v64_v34 }
  0x9b   :  { %vm198_vm1 = vmand %vm102_vm14, %vm182_vm13 }
  0x9c   :  { %v6408_v37 = vand.u32 4294901760, %v6405_v36  ;;  %v6411_v38 = vand.u32 4294901760, %v6402_v35 }
  0x9d   :  { %v147_v39 = vpop.permute.xlu1 %146  ;;  %v67_v40 = vpop.permute.xlu0 %66 }
  0x9e   :  { %vm183_vm15 = vcmp.lt.s32.totalorder %v6359_v0, %v147_v39  ;;  %vm103_vm0 = vcmp.ge.s32.totalorder %v6359_v0, %v67_v40  ;;  %v483_v41 = vsub.f32 %v6405_v36, %v6408_v37  ;;  %v493_v42 = vsub.f32 %v6402_v35, %v6411_v38 }
  0x9f   :  { %vm199_vm2 = vmand %vm103_vm0, %vm183_vm15 }
  0xa0   :  { %v484_v43 = vand.u32 4294901760, %v483_v41  ;;  %v494_v44 = vand.u32 4294901760, %v493_v42 }
  0xa1   :  { %v254_v46 = vpop.permute.xlu1 %253  ;;  %v249_v47 = vpop.permute.xlu0 %248 }
  0xa2   :  { %v311_v49 = vsel %vm199_vm2, %v254_v46, 0.0  ;;  %v310_v50 = vsel %vm198_vm1, %v249_v47, 0.0  ;;  %4764 = vmatprep.mubr.f32.mxu0 %v484_v43  ;;  %4920 = vmatprep.mubr.f32.mxu1 %v484_v43 }
  0xa3   :  { %v362_v51 = vsel %vm345_vm4, %v311_v49, 0  ;;  %v359_v54 = vsel %vm345_vm4, %v310_v50, 0  ;;  %4765 = vmatmul.mubr.f32.gmra.mrb[2].mxu0 %v494_v44  ;;  %4921 = vmatmul.mubr.f32.gmra.mrb[2].mxu1 %v494_v44 }
  0xa4   :  { %v6423_v55 = vand.u32 4294901760, %v362_v51  ;;  %v6425_v57 = vand.u32 4294901760, %v359_v54 }
  0xa5   :  { %v150_v58 = vpop.permute.xlu1 %149  ;;  %v70_v59 = vpop.permute.xlu0 %69 }
  0xa6   :  { %v6428_v62 = vsub.f32 %v362_v51, %v6423_v55  ;;  %v6431_v63 = vsub.f32 %v359_v54, %v6425_v57  ;;  %vm184_vm3 = vcmp.lt.s32.totalorder %v6359_v0, %v150_v58  ;;  %vm104_vm5 = vcmp.ge.s32.totalorder %v6359_v0, %v70_v59 }
  0xa7   :  { %vm200_vm8 = vmand %vm104_vm5, %vm184_vm3 }
  0xa8   :  { %v6434_v1 = vand.u32 4294901760, %v6431_v63  ;;  %v6437_v2 = vand.u32 4294901760, %v6428_v62 }
  0xa9   :  { %v153_v3 = vpop.permute.xlu1 %152  ;;  %v73_v4 = vpop.permute.xlu0 %72 }
  0xaa   :  { %vm185_vm6 = vcmp.lt.s32.totalorder %v6359_v0, %v153_v3  ;;  %vm105_vm7 = vcmp.ge.s32.totalorder %v6359_v0, %v73_v4  ;;  %v503_v5 = vsub.f32 %v6431_v63, %v6434_v1  ;;  %v513_v6 = vsub.f32 %v6428_v62, %v6437_v2 }
  0xab   :  { %vm201_vm9 = vmand %vm105_vm7, %vm185_vm6 }
  0xac   :  { %v504_v7 = vand.u32 4294901760, %v503_v5  ;;  %v514_v8 = vand.u32 4294901760, %v513_v6 }
  0xad   :  { %v264_v11 = vpop.permute.xlu1 %263  ;;  %v259_v12 = vpop.permute.xlu0 %258 }
  0xae   :  { %v313_v19 = vsel %vm201_vm9, %v264_v11, 0.0  ;;  %v312_v20 = vsel %vm200_vm8, %v259_v12, 0.0  ;;  %4767 = vmatprep.mubr.f32.mxu0 %v504_v7  ;;  %4923 = vmatprep.mubr.f32.mxu1 %v504_v7 }
  0xaf   :  { %v368_v21 = vsel %vm345_vm4, %v313_v19, 0  ;;  %v365_v22 = vsel %vm345_vm4, %v312_v20, 0  ;;  %4768 = vmatmul.mubr.f32.gmra.mrb[4].mxu0 %v514_v8  ;;  %4924 = vmatmul.mubr.f32.gmra.mrb[4].mxu1 %v514_v8 }
  0xb0   :  { %v6449_v23 = vand.u32 4294901760, %v368_v21  ;;  %v6451_v24 = vand.u32 4294901760, %v365_v22 }
  0xb1   :  { %v156_v25 = vpop.permute.xlu1 %155  ;;  %v76_v26 = vpop.permute.xlu0 %75 }
  0xb2   :  { %v6454_v27 = vsub.f32 %v368_v21, %v6449_v23  ;;  %v6457_v28 = vsub.f32 %v365_v22, %v6451_v24  ;;  %vm186_vm10 = vcmp.lt.s32.totalorder %v6359_v0, %v156_v25  ;;  %vm106_vm11 = vcmp.ge.s32.totalorder %v6359_v0, %v76_v26 }
  0xb3   :  { %vm202_vm14 = vmand %vm106_vm11, %vm186_vm10 }
  0xb4   :  { %v6460_v29 = vand.u32 4294901760, %v6457_v28  ;;  %v6463_v30 = vand.u32 4294901760, %v6454_v27 }
  0xb5   :  { %v159_v33 = vpop.permute.xlu1 %158  ;;  %v79_v34 = vpop.permute.xlu0 %78 }
  0xb6   :  { %vm187_vm12 = vcmp.lt.s32.totalorder %v6359_v0, %v159_v33  ;;  %vm107_vm13 = vcmp.ge.s32.totalorder %v6359_v0, %v79_v34  ;;  %v523_v39 = vsub.f32 %v6457_v28, %v6460_v29  ;;  %v533_v40 = vsub.f32 %v6454_v27, %v6463_v30 }
  0xb7   :  { %vm203_vm15 = vmand %vm107_vm13, %vm187_vm12 }
  0xb8   :  { %v524_v41 = vand.u32 4294901760, %v523_v39  ;;  %v534_v42 = vand.u32 4294901760, %v533_v40 }
  0xb9   :  { %v274_v43 = vpop.permute.xlu1 %273  ;;  %v269_v44 = vpop.permute.xlu0 %268 }
  0xba   :  { %v315_v46 = vsel %vm203_vm15, %v274_v43, 0.0  ;;  %v314_v47 = vsel %vm202_vm14, %v269_v44, 0.0  ;;  %4770 = vmatprep.mubr.f32.mxu0 %v524_v41  ;;  %4926 = vmatprep.mubr.f32.mxu1 %v524_v41 }
  0xbb   :  { %v374_v49 = vsel %vm345_vm4, %v315_v46, 0  ;;  %v371_v50 = vsel %vm345_vm4, %v314_v47, 0  ;;  %4771 = vmatmul.mubr.f32.gmra.mrb[6].mxu0 %v534_v42  ;;  %4927 = vmatmul.mubr.f32.gmra.mrb[6].mxu1 %v534_v42 }
  0xbc   :  { %v6475_v51 = vand.u32 4294901760, %v374_v49  ;;  %v6477_v54 = vand.u32 4294901760, %v371_v50 }
  0xbd   :  { %v162_v58 = vpop.permute.xlu1 %161  ;;  %v82_v59 = vpop.permute.xlu0 %81 }
  0xbe   :  { %v6480_v3 = vsub.f32 %v374_v49, %v6475_v51  ;;  %v6483_v4 = vsub.f32 %v371_v50, %v6477_v54  ;;  %vm188_vm0 = vcmp.lt.s32.totalorder %v6359_v0, %v162_v58  ;;  %vm108_vm1 = vcmp.ge.s32.totalorder %v6359_v0, %v82_v59 }
  0xbf   :  { %vm204_vm5 = vmand %vm108_vm1, %vm188_vm0 }
  0xc0   :  { %v6486_v5 = vand.u32 4294901760, %v6483_v4  ;;  %v6489_v6 = vand.u32 4294901760, %v6480_v3 }
  0xc1   :  { %v165_v7 = vpop.permute.xlu1 %164  ;;  %v85_v8 = vpop.permute.xlu0 %84 }
  0xc2   :  { %vm189_vm2 = vcmp.lt.s32.totalorder %v6359_v0, %v165_v7  ;;  %vm109_vm3 = vcmp.ge.s32.totalorder %v6359_v0, %v85_v8  ;;  %v543_v11 = vsub.f32 %v6483_v4, %v6486_v5  ;;  %v553_v12 = vsub.f32 %v6480_v3, %v6489_v6 }
  0xc3   :  { %vm205_vm6 = vmand %vm109_vm3, %vm189_vm2 }
  0xc4   :  { %v544_v19 = vand.u32 4294901760, %v543_v11  ;;  %v554_v20 = vand.u32 4294901760, %v553_v12 }
  0xc5   :  { %v284_v21 = vpop.permute.xlu1 %283  ;;  %v279_v22 = vpop.permute.xlu0 %278 }
  0xc6   :  { %v317_v25 = vsel %vm205_vm6, %v284_v21, 0.0  ;;  %v316_v26 = vsel %vm204_vm5, %v279_v22, 0.0  ;;  %4773 = vmatprep.mubr.f32.mxu0 %v544_v19  ;;  %4929 = vmatprep.mubr.f32.mxu1 %v544_v19 }
  0xc7   :  { %v380_v33 = vsel %vm345_vm4, %v317_v25, 0  ;;  %v377_v34 = vsel %vm345_vm4, %v316_v26, 0  ;;  %4774 = vmatmul.mubr.f32.gmra.mrb[8].mxu0 %v554_v20  ;;  %4930 = vmatmul.mubr.f32.gmra.mrb[8].mxu1 %v554_v20 }
  0xc8   :  { %v6501_v39 = vand.u32 4294901760, %v380_v33  ;;  %v6503_v40 = vand.u32 4294901760, %v377_v34 }
  0xc9   :  { %v168_v41 = vpop.permute.xlu1 %167  ;;  %v88_v42 = vpop.permute.xlu0 %87 }
  0xca   :  { %v6506_v43 = vsub.f32 %v380_v33, %v6501_v39  ;;  %v6509_v44 = vsub.f32 %v377_v34, %v6503_v40  ;;  %vm190_vm7 = vcmp.lt.s32.totalorder %v6359_v0, %v168_v41  ;;  %vm110_vm8 = vcmp.ge.s32.totalorder %v6359_v0, %v88_v42 }
  0xcb   :  { %vm206_vm11 = vmand %vm110_vm8, %vm190_vm7 }
  0xcc   :  { %v6512_v46 = vand.u32 4294901760, %v6509_v44  ;;  %v6515_v47 = vand.u32 4294901760, %v6506_v43 }
  0xcd   :  { %v171_v49 = vpop.permute.xlu1 %170  ;;  %v91_v50 = vpop.permute.xlu0 %90 }
  0xce   :  { %vm191_vm9 = vcmp.lt.s32.totalorder %v6359_v0, %v171_v49  ;;  %vm111_vm10 = vcmp.ge.s32.totalorder %v6359_v0, %v91_v50  ;;  %v563_v58 = vsub.f32 %v6509_v44, %v6512_v46  ;;  %v573_v59 = vsub.f32 %v6506_v43, %v6515_v47 }
  0xcf   :  { %vm207_vm12 = vmand %vm111_vm10, %vm191_vm9 }
  0xd0   :  { %v564_v7 = vand.u32 4294901760, %v563_v58  ;;  %v574_v8 = vand.u32 4294901760, %v573_v59 }
  0xd1   :  { %v294_v11 = vpop.permute.xlu1 %293  ;;  %v289_v12 = vpop.permute.xlu0 %288 }
  0xd2   :  { %v319_v19 = vsel %vm207_vm12, %v294_v11, 0.0  ;;  %v318_v20 = vsel %vm206_vm11, %v289_v12, 0.0  ;;  %4776 = vmatprep.mubr.f32.mxu0 %v564_v7  ;;  %4932 = vmatprep.mubr.f32.mxu1 %v564_v7 }
  0xd3   :  { %v386_v21 = vsel %vm345_vm4, %v319_v19, 0  ;;  %v383_v22 = vsel %vm345_vm4, %v318_v20, 0  ;;  %4777 = vmatmul.mubr.f32.gmra.mrb[10].mxu0 %v574_v8  ;;  %4933 = vmatmul.mubr.f32.gmra.mrb[10].mxu1 %v574_v8 }
  0xd4   :  { %v6527_v25 = vand.u32 4294901760, %v386_v21  ;;  %v6529_v26 = vand.u32 4294901760, %v383_v22 }
  0xd5   :  { %v174_v33 = vpop.permute.xlu1 %173  ;;  %v94_v34 = vpop.permute.xlu0 %93 }
  0xd6   :  { %v6532_v41 = vsub.f32 %v386_v21, %v6527_v25  ;;  %v6535_v42 = vsub.f32 %v383_v22, %v6529_v26  ;;  %vm192_vm13 = vcmp.lt.s32.totalorder %v6359_v0, %v174_v33  ;;  %vm112_vm14 = vcmp.ge.s32.totalorder %v6359_v0, %v94_v34 }
  0xd7   :  { %vm208_vm1 = vmand %vm112_vm14, %vm192_vm13 }
  0xd8   :  { %v6538_v49 = vand.u32 4294901760, %v6535_v42  ;;  %v6541_v50 = vand.u32 4294901760, %v6532_v41 }
  0xd9   :  { %v177_v58 = vpop.permute.xlu1 %176  ;;  %v97_v59 = vpop.permute.xlu0 %96 }
  0xda   :  { %vm193_vm15 = vcmp.lt.s32.totalorder %v6359_v0, %v177_v58  ;;  %vm113_vm0 = vcmp.ge.s32.totalorder %v6359_v0, %v97_v59  ;;  %v583_v7 = vsub.f32 %v6535_v42, %v6538_v49  ;;  %v593_v8 = vsub.f32 %v6532_v41, %v6541_v50 }
  0xdb   :  { %vm209_vm2 = vmand %vm113_vm0, %vm193_vm15 }
  0xdc   :  { %v584_v11 = vand.u32 4294901760, %v583_v7  ;;  %v594_v12 = vand.u32 4294901760, %v593_v8 }
  0xdd   :  { %v304_v19 = vpop.permute.xlu1 %303  ;;  %v299_v20 = vpop.permute.xlu0 %298 }
  0xde   :  { %v321_v21 = vsel %vm209_vm2, %v304_v19, 0.0  ;;  %v320_v22 = vsel %vm208_vm1, %v299_v20, 0.0  ;;  %4779 = vmatprep.mubr.f32.mxu0 %v584_v11  ;;  %4935 = vmatprep.mubr.f32.mxu1 %v584_v11 }
  0xdf   :  { %v392_v33 = vsel %vm345_vm4, %v321_v21, 0  ;;  %v389_v0 = vsel %vm345_vm4, %v320_v22, 0  ;;  %4780 = vmatmul.mubr.f32.gmra.mrb[12].mxu0 %v594_v12  ;;  %4936 = vmatmul.mubr.f32.gmra.mrb[12].mxu1 %v594_v12  ;;  %vm6122_vm4 = vmmov 0  }
  0xe0   :  { %v6553_v34 = vand.u32 4294901760, %v392_v33  ;;  %v6555_v58 = vand.u32 4294901760, %v389_v0 }
  0xe2   :  { %v6558_v59 = vsub.f32 %v392_v33, %v6553_v34  ;;  %v6561_v7 = vsub.f32 %v389_v0, %v6555_v58 }
  0xe4   :  { %v6564_v8 = vand.u32 4294901760, %v6561_v7  ;;  %v6567_v11 = vand.u32 4294901760, %v6558_v59 }
  0xe6   :  { %v603_v19 = vsub.f32 %v6561_v7, %v6564_v8  ;;  %v613_v12 = vsub.f32 %v6558_v59, %v6567_v11 }
  0xe8   :  { %v604_v20 = vand.u32 4294901760, %v603_v19  ;;  %v614_v21 = vand.u32 4294901760, %v613_v12 }
  0xea   :  { %4782 = vmatprep.mubr.f32.mxu0 %v604_v20  ;;  %4938 = vmatprep.mubr.f32.mxu1 %v604_v20 }
  0xeb   :  { %4783 = vmatmul.mubr.f32.gmra.mrb[14].mxu0 %v614_v21  ;;  %4939 = vmatmul.mubr.f32.gmra.mrb[14].mxu1 %v614_v21 }
  0xec   :  { %4787 = vmatprep.mubr.f32.mxu0 %v6369_v10  ;;  %4943 = vmatprep.mubr.f32.mxu1 %v6369_v10 }
  0xef   :  { %4788 = vmatmul.mubr.f32.vlgmr.msra.gmra.mrb[0].mxu0 %v6367_v9  ;;  %4944 = vmatmul.mubr.f32.vlgmr.msra.gmra.mrb[0].mxu1 %v6367_v9 }
  0xf0   :  { %4968 = vmatpush3.msra.mxu1 %v6312_v45  ;;  %4790 = vmatprep.mubr.f32.mxu0 %v6395_v32 }
  0xf1   :  { %4946 = vmatprep.mubr.f32.mxu1 %v6395_v32  ;;  %4812 = vmatpush3.msra.mxu0 %v6335_v53 }
  0xf2   :  { %4993 = vmatprep.subr.mxu1 %v6220_v16  ;;  %4837 = vmatprep.subr.mxu0 %v6217_v15 }
  0xf3   :  { %4791 = vmatmul.mubr.f32.gmra.mrb[2].mxu0 %v6393_v31  ;;  %4947 = vmatmul.mubr.f32.gmra.mrb[2].mxu1 %v6393_v31 }
  0xf4   :  { %4793 = vmatprep.mubr.f32.mxu0 %v6425_v57  ;;  %4949 = vmatprep.mubr.f32.mxu1 %v6425_v57 }
  0xf7   :  { %4794 = vmatmul.mubr.f32.gmra.mrb[4].mxu0 %v6423_v55  ;;  %4950 = vmatmul.mubr.f32.gmra.mrb[4].mxu1 %v6423_v55 }
  0xf8   :  { %4796 = vmatprep.mubr.f32.mxu0 %v6451_v24  ;;  %4952 = vmatprep.mubr.f32.mxu1 %v6451_v24 }
  0xfb   :  { %4797 = vmatmul.mubr.f32.gmra.mrb[6].mxu0 %v6449_v23  ;;  %4953 = vmatmul.mubr.f32.gmra.mrb[6].mxu1 %v6449_v23 }
  0xfc   :  { %4799 = vmatprep.mubr.f32.mxu0 %v6477_v54  ;;  %4955 = vmatprep.mubr.f32.mxu1 %v6477_v54 }
  0xff   :  { %4800 = vmatmul.mubr.f32.gmra.mrb[8].mxu0 %v6475_v51  ;;  %4956 = vmatmul.mubr.f32.gmra.mrb[8].mxu1 %v6475_v51 }
 0x100   :  { %4802 = vmatprep.mubr.f32.mxu0 %v6503_v40  ;;  %4958 = vmatprep.mubr.f32.mxu1 %v6503_v40 }
 0x103   :  { %4803 = vmatmul.mubr.f32.gmra.mrb[10].mxu0 %v6501_v39  ;;  %4959 = vmatmul.mubr.f32.gmra.mrb[10].mxu1 %v6501_v39 }
 0x104   :  { %4805 = vmatprep.mubr.f32.mxu0 %v6529_v26  ;;  %4961 = vmatprep.mubr.f32.mxu1 %v6529_v26 }
 0x107   :  { %4806 = vmatmul.mubr.f32.gmra.mrb[12].mxu0 %v6527_v25  ;;  %4962 = vmatmul.mubr.f32.gmra.mrb[12].mxu1 %v6527_v25 }
 0x108   :  { %4808 = vmatprep.mubr.f32.mxu0 %v6555_v58  ;;  %4964 = vmatprep.mubr.f32.mxu1 %v6555_v58 }
 0x10b   :  { %4809 = vmatmul.mubr.f32.gmra.mrb[14].mxu0 %v6553_v34  ;;  %4965 = vmatmul.mubr.f32.gmra.mrb[14].mxu1 %v6553_v34 }
 0x10c   :  { %4813 = vmatprep.mubr.f32.mxu0 %v6375_v14  ;;  %4969 = vmatprep.mubr.f32.mxu1 %v6375_v14 }
 0x10f   :  { %4814 = vmatmul.mubr.f32.vlgmr.msra.gmra.mrb[0].mxu0 %v6372_v13  ;;  %4970 = vmatmul.mubr.f32.vlgmr.msra.gmra.mrb[0].mxu1 %v6372_v13 }
 0x110   :  { %4994 = vmatpush3.msra.mxu1 %v6220_v16  ;;  %4816 = vmatprep.mubr.f32.mxu0 %v6405_v36 }
 0x111   :  { %4972 = vmatprep.mubr.f32.mxu1 %v6405_v36  ;;  %4838 = vmatpush3.msra.mxu0 %v6217_v15 }
 0x112   :  { %5019 = vmatprep.subr.mxu1 %v6321_v48  ;;  %4863 = vmatprep.subr.mxu0 %v6345_v56 }
 0x113   :  { %4817 = vmatmul.mubr.f32.gmra.mrb[2].mxu0 %v6402_v35  ;;  %4973 = vmatmul.mubr.f32.gmra.mrb[2].mxu1 %v6402_v35 }
 0x114   :  { %4819 = vmatprep.mubr.f32.mxu0 %v6431_v63  ;;  %4975 = vmatprep.mubr.f32.mxu1 %v6431_v63 }
 0x117   :  { %4820 = vmatmul.mubr.f32.gmra.mrb[4].mxu0 %v6428_v62  ;;  %4976 = vmatmul.mubr.f32.gmra.mrb[4].mxu1 %v6428_v62 }
 0x118   :  { %4822 = vmatprep.mubr.f32.mxu0 %v6457_v28  ;;  %4978 = vmatprep.mubr.f32.mxu1 %v6457_v28 }
 0x11b   :  { %4823 = vmatmul.mubr.f32.gmra.mrb[6].mxu0 %v6454_v27  ;;  %4979 = vmatmul.mubr.f32.gmra.mrb[6].mxu1 %v6454_v27 }
 0x11c   :  { %4825 = vmatprep.mubr.f32.mxu0 %v6483_v4  ;;  %4981 = vmatprep.mubr.f32.mxu1 %v6483_v4 }
 0x11f   :  { %4826 = vmatmul.mubr.f32.gmra.mrb[8].mxu0 %v6480_v3  ;;  %4982 = vmatmul.mubr.f32.gmra.mrb[8].mxu1 %v6480_v3 }
 0x120   :  { %4828 = vmatprep.mubr.f32.mxu0 %v6509_v44  ;;  %4984 = vmatprep.mubr.f32.mxu1 %v6509_v44 }
 0x123   :  { %4829 = vmatmul.mubr.f32.gmra.mrb[10].mxu0 %v6506_v43  ;;  %4985 = vmatmul.mubr.f32.gmra.mrb[10].mxu1 %v6506_v43 }
 0x124   :  { %4831 = vmatprep.mubr.f32.mxu0 %v6535_v42  ;;  %4987 = vmatprep.mubr.f32.mxu1 %v6535_v42 }
 0x127   :  { %4832 = vmatmul.mubr.f32.gmra.mrb[12].mxu0 %v6532_v41  ;;  %4988 = vmatmul.mubr.f32.gmra.mrb[12].mxu1 %v6532_v41 }
 0x128   :  { %4834 = vmatprep.mubr.f32.mxu0 %v6561_v7  ;;  %4990 = vmatprep.mubr.f32.mxu1 %v6561_v7 }
 0x12b   :  { %4835 = vmatmul.mubr.f32.gmra.mrb[14].mxu0 %v6558_v59  ;;  %4991 = vmatmul.mubr.f32.gmra.mrb[14].mxu1 %v6558_v59 }
 0x12c   :  { %4839 = vmatprep.mubr.f32.mxu0 %v6378_v17  ;;  %4995 = vmatprep.mubr.f32.mxu1 %v6378_v17 }
 0x12f   :  { %4840 = vmatmul.mubr.f32.vlgmr.msra.gmra.mrb[0].mxu0 %v6381_v18  ;;  %4996 = vmatmul.mubr.f32.vlgmr.msra.gmra.mrb[0].mxu1 %v6381_v18 }
 0x130   :  { %5020 = vmatpush3.msra.mxu1 %v6321_v48  ;;  %4842 = vmatprep.mubr.f32.mxu0 %v6408_v37 }
 0x131   :  { %4998 = vmatprep.mubr.f32.mxu1 %v6408_v37  ;;  %4864 = vmatpush3.msra.mxu0 %v6345_v56 }
 0x132   :  { %5045 = vmatprep.subr.mxu1 %v6220_v16  ;;  %4889 = vmatprep.subr.mxu0 %v6217_v15 }
 0x133   :  { %4843 = vmatmul.mubr.f32.gmra.mrb[2].mxu0 %v6411_v38  ;;  %4999 = vmatmul.mubr.f32.gmra.mrb[2].mxu1 %v6411_v38 }
 0x134   :  { %4845 = vmatprep.mubr.f32.mxu0 %v6434_v1  ;;  %5001 = vmatprep.mubr.f32.mxu1 %v6434_v1 }
 0x137   :  { %4846 = vmatmul.mubr.f32.gmra.mrb[4].mxu0 %v6437_v2  ;;  %5002 = vmatmul.mubr.f32.gmra.mrb[4].mxu1 %v6437_v2 }
 0x138   :  { %4848 = vmatprep.mubr.f32.mxu0 %v6460_v29  ;;  %5004 = vmatprep.mubr.f32.mxu1 %v6460_v29 }
 0x13b   :  { %4849 = vmatmul.mubr.f32.gmra.mrb[6].mxu0 %v6463_v30  ;;  %5005 = vmatmul.mubr.f32.gmra.mrb[6].mxu1 %v6463_v30 }
 0x13c   :  { %4851 = vmatprep.mubr.f32.mxu0 %v6486_v5  ;;  %5007 = vmatprep.mubr.f32.mxu1 %v6486_v5 }
 0x13f   :  { %4852 = vmatmul.mubr.f32.gmra.mrb[8].mxu0 %v6489_v6  ;;  %5008 = vmatmul.mubr.f32.gmra.mrb[8].mxu1 %v6489_v6 }
 0x140   :  { %4854 = vmatprep.mubr.f32.mxu0 %v6512_v46  ;;  %5010 = vmatprep.mubr.f32.mxu1 %v6512_v46 }
 0x143   :  { %4855 = vmatmul.mubr.f32.gmra.mrb[10].mxu0 %v6515_v47  ;;  %5011 = vmatmul.mubr.f32.gmra.mrb[10].mxu1 %v6515_v47 }
 0x144   :  { %4857 = vmatprep.mubr.f32.mxu0 %v6538_v49  ;;  %5013 = vmatprep.mubr.f32.mxu1 %v6538_v49 }
 0x147   :  { %4858 = vmatmul.mubr.f32.gmra.mrb[12].mxu0 %v6541_v50  ;;  %5014 = vmatmul.mubr.f32.gmra.mrb[12].mxu1 %v6541_v50 }
 0x148   :  { %4860 = vmatprep.mubr.f32.mxu0 %v6564_v8  ;;  %5016 = vmatprep.mubr.f32.mxu1 %v6564_v8 }
 0x14b   :  { %4861 = vmatmul.mubr.f32.gmra.mrb[14].mxu0 %v6567_v11  ;;  %5017 = vmatmul.mubr.f32.gmra.mrb[14].mxu1 %v6567_v11 }
 0x14c   :  { %4865 = vmatprep.mubr.f32.mxu0 %v6369_v10  ;;  %5021 = vmatprep.mubr.f32.mxu1 %v6369_v10 }
 0x14f   :  { %4866 = vmatmul.mubr.f32.vlgmr.msra.gmra.mrb[0].mxu0 %v6367_v9  ;;  %5022 = vmatmul.mubr.f32.vlgmr.msra.gmra.mrb[0].mxu1 %v6367_v9 }
 0x150   :  { %5046 = vmatpush3.msra.mxu1 %v6220_v16  ;;  %4868 = vmatprep.mubr.f32.mxu0 %v6395_v32 }
 0x151   :  { %5024 = vmatprep.mubr.f32.mxu1 %v6395_v32  ;;  %4890 = vmatpush3.msra.mxu0 %v6217_v15 }
 0x153   :  { %4869 = vmatmul.mubr.f32.gmra.mrb[2].mxu0 %v6393_v31  ;;  %5025 = vmatmul.mubr.f32.gmra.mrb[2].mxu1 %v6393_v31 }
 0x154   :  { %4871 = vmatprep.mubr.f32.mxu0 %v6425_v57  ;;  %5027 = vmatprep.mubr.f32.mxu1 %v6425_v57 }
 0x157   :  { %4872 = vmatmul.mubr.f32.gmra.mrb[4].mxu0 %v6423_v55  ;;  %5028 = vmatmul.mubr.f32.gmra.mrb[4].mxu1 %v6423_v55 }
 0x158   :  { %4874 = vmatprep.mubr.f32.mxu0 %v6451_v24  ;;  %5030 = vmatprep.mubr.f32.mxu1 %v6451_v24 }
 0x15b   :  { %4875 = vmatmul.mubr.f32.gmra.mrb[6].mxu0 %v6449_v23  ;;  %5031 = vmatmul.mubr.f32.gmra.mrb[6].mxu1 %v6449_v23 }
 0x15c   :  { %4877 = vmatprep.mubr.f32.mxu0 %v6477_v54  ;;  %5033 = vmatprep.mubr.f32.mxu1 %v6477_v54 }
 0x15f   :  { %4878 = vmatmul.mubr.f32.gmra.mrb[8].mxu0 %v6475_v51  ;;  %5034 = vmatmul.mubr.f32.gmra.mrb[8].mxu1 %v6475_v51 }
 0x160   :  { %4880 = vmatprep.mubr.f32.mxu0 %v6503_v40  ;;  %5036 = vmatprep.mubr.f32.mxu1 %v6503_v40 }
 0x163   :  { %4881 = vmatmul.mubr.f32.gmra.mrb[10].mxu0 %v6501_v39  ;;  %5037 = vmatmul.mubr.f32.gmra.mrb[10].mxu1 %v6501_v39 }
 0x164   :  { %4883 = vmatprep.mubr.f32.mxu0 %v6529_v26  ;;  %5039 = vmatprep.mubr.f32.mxu1 %v6529_v26 }
 0x167   :  { %4884 = vmatmul.mubr.f32.gmra.mrb[12].mxu0 %v6527_v25  ;;  %5040 = vmatmul.mubr.f32.gmra.mrb[12].mxu1 %v6527_v25 }
 0x168   :  { %4886 = vmatprep.mubr.f32.mxu0 %v6555_v58  ;;  %5042 = vmatprep.mubr.f32.mxu1 %v6555_v58 }
 0x16b   :  { %4887 = vmatmul.mubr.f32.gmra.mrb[14].mxu0 %v6553_v34  ;;  %5043 = vmatmul.mubr.f32.gmra.mrb[14].mxu1 %v6553_v34 }
 0x16c   :  { %4891 = vmatprep.mubr.f32.mxu0 %v6369_v10  ;;  %5047 = vmatprep.mubr.f32.mxu1 %v6369_v10 }
 0x16f   :  { %4892 = vmatmul.mubr.f32.vlgmr.msra.gmra.mrb[0].mxu0 %v6367_v9  ;;  %5048 = vmatmul.mubr.f32.vlgmr.msra.gmra.mrb[0].mxu1 %v6367_v9 }
 0x170   :  { %4894 = vmatprep.mubr.f32.mxu0 %v6395_v32  ;;  %5050 = vmatprep.mubr.f32.mxu1 %v6395_v32 }
 0x173   :  { %4895 = vmatmul.mubr.f32.gmra.mrb[2].mxu0 %v6393_v31  ;;  %5051 = vmatmul.mubr.f32.gmra.mrb[2].mxu1 %v6393_v31 }
 0x174   :  { %4897 = vmatprep.mubr.f32.mxu0 %v6425_v57  ;;  %5053 = vmatprep.mubr.f32.mxu1 %v6425_v57 }
 0x177   :  { %4898 = vmatmul.mubr.f32.gmra.mrb[4].mxu0 %v6423_v55  ;;  %5054 = vmatmul.mubr.f32.gmra.mrb[4].mxu1 %v6423_v55 }
 0x178   :  { %4900 = vmatprep.mubr.f32.mxu0 %v6451_v24  ;;  %5056 = vmatprep.mubr.f32.mxu1 %v6451_v24 }
 0x17b   :  { %4901 = vmatmul.mubr.f32.gmra.mrb[6].mxu0 %v6449_v23  ;;  %5057 = vmatmul.mubr.f32.gmra.mrb[6].mxu1 %v6449_v23 }
 0x17c   :  { %4903 = vmatprep.mubr.f32.mxu0 %v6477_v54  ;;  %5059 = vmatprep.mubr.f32.mxu1 %v6477_v54 }
 0x17f   :  { %4904 = vmatmul.mubr.f32.gmra.mrb[8].mxu0 %v6475_v51  ;;  %5060 = vmatmul.mubr.f32.gmra.mrb[8].mxu1 %v6475_v51 }
 0x180   :  { %4906 = vmatprep.mubr.f32.mxu0 %v6503_v40  ;;  %5062 = vmatprep.mubr.f32.mxu1 %v6503_v40 }
 0x183   :  { %4907 = vmatmul.mubr.f32.gmra.mrb[10].mxu0 %v6501_v39  ;;  %5063 = vmatmul.mubr.f32.gmra.mrb[10].mxu1 %v6501_v39 }
 0x184   :  { %4909 = vmatprep.mubr.f32.mxu0 %v6529_v26  ;;  %5065 = vmatprep.mubr.f32.mxu1 %v6529_v26 }
 0x187   :  { %4910 = vmatmul.mubr.f32.gmra.mrb[12].mxu0 %v6527_v25  ;;  %5066 = vmatmul.mubr.f32.gmra.mrb[12].mxu1 %v6527_v25 }
 0x188   :  { %4912 = vmatprep.mubr.f32.mxu0 %v6555_v58  ;;  %5068 = vmatprep.mubr.f32.mxu1 %v6555_v58 }
 0x18b   :  { %4913 = vmatmul.mubr.f32.gmra.mrb[14].mxu0 %v6553_v34  ;;  %5069 = vmatmul.mubr.f32.gmra.mrb[14].mxu1 %v6553_v34 }
 0x242   :  { %v6747_v9 = vpop.f32.mrb[0].mxu0  ;;  %v6749_v10 = vpop.f32.mrb[0].mxu1 }
 0x243   :  { %v6751_v13 = vpop.f32.mrb[1].mxu0  ;;  %v6753_v14 = vpop.f32.mrb[1].mxu1  ;;  %v2737_v17 = vmul.f32 %v6749_v10, %v6749_v10  ;;  %v2577_v18 = vmul.f32 %v6747_v9, %v6747_v9 }
 0x244   :  { %v2576_v37 = vmul.f32 %v6751_v13, %v6751_v13  ;;  %v2736_v1 = vmul.f32 %v6753_v14, %v6753_v14 }
 0x245   :  { %2754 = vadd.xlane.f32.xlu0 %v2737_v17  ;;  %2594 = vadd.xlane.f32.xlu1 %v2577_v18 }
 0x246   :  { %v6759_v31 = vpop.f32.mrb[2].mxu0  ;;  %v6761_v32 = vpop.f32.mrb[2].mxu1 }
 0x247   :  { %v6763_v35 = vpop.f32.mrb[3].mxu0  ;;  %v6765_v36 = vpop.f32.mrb[3].mxu1  ;;  %v2579_v29 = vmul.f32 %v6759_v31, %v6759_v31  ;;  %v2739_v5 = vmul.f32 %v6761_v32, %v6761_v32 }
 0x248   :  { %v2578_v38 = vmul.f32 %v6763_v35, %v6763_v35  ;;  %v2738_v2 = vmul.f32 %v6765_v36, %v6765_v36 }
 0x249   :  { %2592 = vadd.xlane.f32.xlu0 %v2576_v37 }
 0x24a   :  { %v6771_v55 = vpop.f32.mrb[4].mxu1  ;;  %2596 = vadd.xlane.f32.xlu1 %v2578_v38  ;;  %v6773_v57 = vpop.f32.mrb[4].mxu0 }
 0x24b   :  { %v6775_v62 = vpop.f32.mrb[5].mxu0  ;;  %v6777_v63 = vpop.f32.mrb[5].mxu1  ;;  %v2581_v46 = vmul.f32 %v6773_v57, %v6773_v57  ;;  %v2741_v49 = vmul.f32 %v6771_v55, %v6771_v55 }
 0x24c   :  { %v2580_v30 = vmul.f32 %v6775_v62, %v6775_v62  ;;  %v2740_v6 = vmul.f32 %v6777_v63, %v6777_v63 }
 0x24d   :  { %2752 = vadd.xlane.f32.xlu0 %v2736_v1 }
 0x24e   :  { %v6783_v23 = vpop.f32.mrb[6].mxu1  ;;  %2756 = vadd.xlane.f32.xlu1 %v2738_v2  ;;  %v6785_v24 = vpop.f32.mrb[6].mxu0 }
 0x24f   :  { %v6787_v27 = vpop.f32.mrb[7].mxu0  ;;  %v6789_v28 = vpop.f32.mrb[7].mxu1  ;;  %v2583_v58 = vmul.f32 %v6785_v24, %v6785_v24  ;;  %v2743_v7 = vmul.f32 %v6783_v23, %v6783_v23 }
 0x250   :  { %v2582_v47 = vmul.f32 %v6787_v27, %v6787_v27  ;;  %v2742_v50 = vmul.f32 %v6789_v28, %v6789_v28 }
 0x251   :  { %2598 = vadd.xlane.f32.xlu0 %v2579_v29 }
 0x252   :  { %v6795_v51 = vpop.f32.mrb[8].mxu1  ;;  %2600 = vadd.xlane.f32.xlu1 %v2580_v30  ;;  %v6797_v54 = vpop.f32.mrb[8].mxu0  ;;  %v7990_v30 = vmov 0.0|0.0  }
 0x253   :  { %v6799_v3 = vpop.f32.mrb[9].mxu0  ;;  %v6801_v4 = vpop.f32.mrb[9].mxu1  ;;  %v2585_v11 = vmul.f32 %v6797_v54, %v6797_v54  ;;  %v2745_v12 = vmul.f32 %v6795_v51, %v6795_v51  ;;  %5491 = vmatprep.subr.bf16.mxu0 %v7990_v30  ;;  %5635 = vmatprep.subr.bf16.mxu1 %v7990_v30 }
 0x254   :  { %v2584_v59 = vmul.f32 %v6799_v3, %v6799_v3  ;;  %v2744_v8 = vmul.f32 %v6801_v4, %v6801_v4 }
 0x255   :  { %2758 = vadd.xlane.f32.xlu0 %v2739_v5 }
 0x256   :  { %v6807_v39 = vpop.f32.mrb[10].mxu1  ;;  %2760 = vadd.xlane.f32.xlu1 %v2740_v6  ;;  %v6809_v40 = vpop.f32.mrb[10].mxu0 }
 0x257   :  { %v6811_v43 = vpop.f32.mrb[11].mxu0  ;;  %v6813_v44 = vpop.f32.mrb[11].mxu1  ;;  %v2587_v21 = vmul.f32 %v6809_v40, %v6809_v40  ;;  %v2747_v18 = vmul.f32 %v6807_v39, %v6807_v39 }
 0x258   :  { %v2586_v19 = vmul.f32 %v6811_v43, %v6811_v43  ;;  %v2746_v20 = vmul.f32 %v6813_v44, %v6813_v44 }
 0x259   :  { %2602 = vadd.xlane.f32.xlu0 %v2581_v46  ;;  %v6106_v46 = vld [vmem:[%s7979_s1] sm:$0xff] }
 0x25a   :  { %v6819_v25 = vpop.f32.mrb[12].mxu1  ;;  %2604 = vadd.xlane.f32.xlu1 %v2582_v47  ;;  %v6821_v26 = vpop.f32.mrb[12].mxu0  ;;  %v3002_v47 = vmul.f32 %v6106_v46, %v6106_v46 }
 0x25b   :  { %v6823_v41 = vpop.f32.mrb[13].mxu0  ;;  %v6825_v42 = vpop.f32.mrb[13].mxu1  ;;  %v2589_v38 = vmul.f32 %v6821_v26, %v6821_v26  ;;  %v2749_v2 = vmul.f32 %v6819_v25, %v6819_v25 }
 0x25c   :  { %v2588_v17 = vmul.f32 %v6823_v41, %v6823_v41  ;;  %v2748_v37 = vmul.f32 %v6825_v42, %v6825_v42 }
 0x25d   :  { %2762 = vadd.xlane.f32.xlu0 %v2741_v49  ;;  %v7988_v49 = vmov 0.0  }
 0x25e   :  { %v6831_v22 = vpop.f32.mrb[14].mxu1  ;;  %2764 = vadd.xlane.f32.xlu1 %v2742_v50  ;;  %v6833_v33 = vpop.f32.mrb[14].mxu0  ;;  %5103 = vmatprep.mubr.msk.f32.mxu0 %vm6122_vm4, %v7988_v49 }
 0x25f   :  { %8075 = vst [vmem:[#allocation13_spill] sm:$0xff] %v6831_v22  ;;  %8076 = vst [vmem:[#allocation14_spill] sm:$0xff] %v6833_v33  ;;  %v6835_v0 = vpop.f32.mrb[15].mxu0  ;;  %v6837_v34 = vpop.f32.mrb[15].mxu1  ;;  %v2591_v5 = vmul.f32 %v6833_v33, %v6833_v33  ;;  %v2751_v6 = vmul.f32 %v6831_v22, %v6831_v22  ;;  %5313 = vmatprep.mubr.msk.f32.mxu1 %vm6122_vm4, %v7988_v49 }
 0x260   :  { %v2590_v1 = vmul.f32 %v6835_v0, %v6835_v0  ;;  %v2750_v29 = vmul.f32 %v6837_v34, %v6837_v34 }
 0x261   :  { %2606 = vadd.xlane.f32.xlu0 %v2583_v58 }
 0x262   :  { %2608 = vadd.xlane.f32.xlu1 %v2584_v59 }
 0x265   :  { %2766 = vadd.xlane.f32.xlu0 %v2743_v7 }
 0x266   :  { %2768 = vadd.xlane.f32.xlu1 %v2744_v8 }
 0x269   :  { %2610 = vadd.xlane.f32.xlu0 %v2585_v11 }
 0x26a   :  { %2612 = vadd.xlane.f32.xlu1 %v2586_v19 }
 0x26d   :  { %2770 = vadd.xlane.f32.xlu0 %v2745_v12 }
 0x26e   :  { %2772 = vadd.xlane.f32.xlu1 %v2746_v20 }
 0x271   :  { %2614 = vadd.xlane.f32.xlu0 %v2587_v21 }
 0x272   :  { %2616 = vadd.xlane.f32.xlu1 %v2588_v17 }
 0x275   :  { %2774 = vadd.xlane.f32.xlu0 %v2747_v18 }
 0x276   :  { %2776 = vadd.xlane.f32.xlu1 %v2748_v37 }
 0x279   :  { %2618 = vadd.xlane.f32.xlu0 %v2589_v38 }
 0x27a   :  { %2620 = vadd.xlane.f32.xlu1 %v2590_v1 }
 0x27d   :  { %2778 = vadd.xlane.f32.xlu0 %v2749_v2 }
 0x27e   :  { %2780 = vadd.xlane.f32.xlu1 %v2750_v29 }
 0x281   :  { %2622 = vadd.xlane.f32.xlu0 %v2591_v5 }
 0x285   :  { %2782 = vadd.xlane.f32.xlu0 %v2751_v6 }
 0x289   :  { %3003 = vadd.xlane.f32.xlu0 %v3002_v47 }
 0x2d2   :  { %v2755_v50 = vpop.xlane.xlu0 %2754  ;;  %v2595_v58 = vpop.xlane.xlu1 %2594 }
 0x2d3   :  { %5970 = vrsqrt.f32 %v2755_v50  ;;  %vm2793_vm3 = vcmp.eq.f32.partialorder %v2755_v50, inf  ;;  %vm2795_vm5 = vcmp.eq.f32.partialorder %v2755_v50, 0.0  ;;  %v2796_v12 = vand.u32 2147483648, %v2755_v50 }
 0x2d4   :  { %5972 = vrsqrt.f32 %v2595_v58  ;;  %vm2633_vm6 = vcmp.eq.f32.partialorder %v2595_v58, inf  ;;  %vm2635_vm7 = vcmp.eq.f32.partialorder %v2595_v58, 0.0  ;;  %v2636_v17 = vand.u32 2147483648, %v2595_v58 }
 0x2d6   :  { %v2593_v59 = vpop.xlane.xlu0 %2592 }
 0x2d7   :  { %5974 = vrsqrt.f32 %v2593_v59  ;;  %v2597_v7 = vpop.xlane.xlu1 %2596  ;;  %vm2626_vm8 = vcmp.eq.f32.partialorder %v2593_v59, inf  ;;  %vm2628_vm9 = vcmp.eq.f32.partialorder %v2593_v59, 0.0  ;;  %v2629_v38 = vand.u32 2147483648, %v2593_v59 }
 0x2d8   :  { %5976 = vrsqrt.f32 %v2597_v7  ;;  %vm2640_vm10 = vcmp.eq.f32.partialorder %v2597_v7, inf  ;;  %vm2642_vm11 = vcmp.eq.f32.partialorder %v2597_v7, 0.0  ;;  %v2643_v29 = vand.u32 2147483648, %v2597_v7 }
 0x2da   :  { %v6884_v8 = vpop.xlane.xlu0 %2752 }
 0x2db   :  { %5978 = vrsqrt.f32 %v6884_v8  ;;  %v6887_v11 = vpop.xlane.xlu1 %2756  ;;  %vm2786_vm12 = vcmp.eq.f32.partialorder %v6884_v8, inf  ;;  %vm2788_vm13 = vcmp.eq.f32.partialorder %v6884_v8, 0.0  ;;  %v2789_v61 = vand.u32 2147483648, %v6884_v8 }
 0x2dc   :  { %5980 = vrsqrt.f32 %v6887_v11  ;;  %vm2800_vm14 = vcmp.eq.f32.partialorder %v6887_v11, inf  ;;  %vm2802_vm15 = vcmp.eq.f32.partialorder %v6887_v11, 0.0 }
 0x2dd   :  { %v5971_v19 = vpop.eup %5970 }
 0x2de   :  { %v5973_v20 = vpop.eup %5972  ;;  %v2792_v21 = vmul.f32 %v5971_v19, %v2755_v50  ;;  %v6890_v18 = vpop.xlane.xlu0 %2598 }
 0x2df   :  { %v2632_v37 = vmul.f32 %v5973_v20, %v2595_v58  ;;  %5982 = vrsqrt.f32 %v6890_v18  ;;  %v6893_v1 = vpop.xlane.xlu1 %2600  ;;  %vm2647_vm0 = vcmp.eq.f32.partialorder %v6890_v18, inf  ;;  %vm2649_vm1 = vcmp.eq.f32.partialorder %v6890_v18, 0.0 }
 0x2e0   :  { %v2794_v2 = vsel %vm2793_vm3, %v2755_v50, %v2792_v21  ;;  %5984 = vrsqrt.f32 %v6893_v1  ;;  %vm2654_vm2 = vcmp.eq.f32.partialorder %v6893_v1, inf  ;;  %vm2656_vm3 = vcmp.eq.f32.partialorder %v6893_v1, 0.0 }
 0x2e1   :  { %v5975_v5 = vpop.eup %5974  ;;  %v2797_v6 = vsel %vm2795_vm5, %v2796_v12, %v2794_v2  ;;  %v2634_v46 = vsel %vm2633_vm6, %v2595_v58, %v2632_v37  ;;  %v2803_v58 = vand.u32 2147483648, %v6887_v11 }
 0x2e2   :  { %v5977_v47 = vpop.eup %5976  ;;  %v2637_v19 = vsel %vm2635_vm7, %v2636_v17, %v2634_v46  ;;  %v2625_v20 = vmul.f32 %v5975_v5, %v2593_v59  ;;  %v6904_v21 = vpop.xlane.xlu0 %2758  ;;  %v2945_v49 = vmax.f32 %v2797_v6, 1e-08  ;;  %v2650_v6 = vand.u32 2147483648, %v6890_v18 }
 0x2e3   :  { %v2639_v30 = vmul.f32 %v5977_v47, %v2597_v7  ;;  %5986 = vrsqrt.f32 %v6904_v21  ;;  %v6908_v50 = vpop.xlane.xlu1 %2760  ;;  %v2897_v12 = vmax.f32 %v2637_v19, 1e-08  ;;  %vm2807_vm5 = vcmp.eq.f32.partialorder %v6904_v21, inf }
 0x2e4   :  { %v2627_v37 = vsel %vm2626_vm8, %v2593_v59, %v2625_v20  ;;  %5988 = vrsqrt.f32 %v6908_v50  ;;  %vm2809_vm6 = vcmp.eq.f32.partialorder %v6904_v21, 0.0  ;;  %vm2814_vm7 = vcmp.eq.f32.partialorder %v6908_v50, inf }
 0x2e5   :  { %v5979_v17 = vpop.eup %5978  ;;  %v2630_v2 = vsel %vm2628_vm9, %v2629_v38, %v2627_v37  ;;  %v2641_v5 = vsel %vm2640_vm10, %v2597_v7, %v2639_v30  ;;  %5990 = vrcp.f32 %v2945_v49  ;;  %vm2816_vm8 = vcmp.eq.f32.partialorder %v6908_v50, 0.0 }
 0x2e6   :  { %v5981_v46 = vpop.eup %5980  ;;  %v2896_v47 = vmax.f32 %v2630_v2, 1e-08  ;;  %v2644_v56 = vsel %vm2642_vm11, %v2643_v29, %v2641_v5  ;;  %v2785_v19 = vmul.f32 %v5979_v17, %v6884_v8  ;;  %v6920_v20 = vpop.xlane.xlu0 %2602  ;;  %5992 = vrcp.f32 %v2897_v12 }
 0x2e7   :  { %v2799_v59 = vmul.f32 %v5981_v46, %v6887_v11  ;;  %v6925_v30 = vpop.xlane.xlu1 %2604  ;;  %v2898_v38 = vmax.f32 %v2644_v56, 1e-08  ;;  %v2657_v29 = vand.u32 2147483648, %v6893_v1  ;;  %vm2661_vm9 = vcmp.eq.f32.partialorder %v6920_v20, inf }
 0x2e8   :  { %v2787_v7 = vsel %vm2786_vm12, %v6884_v8, %v2785_v19  ;;  %5994 = vrcp.f32 %v2896_v47  ;;  %vm2663_vm10 = vcmp.eq.f32.partialorder %v6920_v20, 0.0  ;;  %vm2668_vm11 = vcmp.eq.f32.partialorder %v6925_v30, inf }
 0x2e9   :  { %v5983_v37 = vpop.eup %5982  ;;  %v2790_v49 = vsel %vm2788_vm13, %v2789_v61, %v2787_v7  ;;  %v2801_v17 = vsel %vm2800_vm14, %v6887_v11, %v2799_v59  ;;  %5996 = vrsqrt.f32 %v6920_v20  ;;  %v2810_v61 = vand.u32 2147483648, %v6904_v21 }
 0x2ea   :  { %v5985_v2 = vpop.eup %5984  ;;  %v2944_v12 = vmax.f32 %v2790_v49, 1e-08  ;;  %v2804_v56 = vsel %vm2802_vm15, %v2803_v58, %v2801_v17  ;;  %v2646_v5 = vmul.f32 %v5983_v37, %v6890_v18  ;;  %v6941_v46 = vpop.xlane.xlu0 %2762  ;;  %5998 = vrsqrt.f32 %v6925_v30 }
 0x2eb   :  { %v2653_v8 = vmul.f32 %v5985_v2, %v6893_v1  ;;  %v6947_v47 = vpop.xlane.xlu1 %2764  ;;  %6000 = vrcp.f32 %v2898_v38  ;;  %v2946_v19 = vmax.f32 %v2804_v56, 1e-08  ;;  %v2817_v2 = vand.u32 2147483648, %v6908_v50 }
 0x2ec   :  { %v2648_v11 = vsel %vm2647_vm0, %v6890_v18, %v2646_v5  ;;  %6002 = vrcp.f32 %v2944_v12  ;;  %v2664_v12 = vand.u32 2147483648, %v6920_v20  ;;  %vm2670_vm12 = vcmp.eq.f32.partialorder %v6925_v30, 0.0 }
 0x2ed   :  { %v5987_v58 = vpop.eup %5986  ;;  %v2651_v59 = vsel %vm2649_vm1, %v2650_v6, %v2648_v11  ;;  %v2655_v7 = vsel %vm2654_vm2, %v6893_v1, %v2653_v8  ;;  %6004 = vrsqrt.f32 %v6941_v46  ;;  %vm2821_vm13 = vcmp.eq.f32.partialorder %v6941_v46, inf }
 0x2ee   :  { %v2899_v37 = vmax.f32 %v2651_v59, 1e-08  ;;  %v2658_v38 = vsel %vm2656_vm3, %v2657_v29, %v2655_v7  ;;  %v2806_v49 = vmul.f32 %v5987_v58, %v6904_v21  ;;  %v6963_v17 = vpop.xlane.xlu0 %2606  ;;  %6006 = vrsqrt.f32 %v6947_v47  ;;  %v5989_v6 = vpop.eup %5988 }
 0x2ef   :  { %v6969_v18 = vpop.xlane.xlu1 %2608  ;;  %6008 = vrcp.f32 %v2946_v19  ;;  %v2900_v1 = vmax.f32 %v2658_v38, 1e-08  ;;  %v6975_v56 = vpop.eup %5990  ;;  %v2813_v8 = vmul.f32 %v5989_v6, %v6908_v50  ;;  %v2671_v19 = vand.u32 2147483648, %v6925_v30 }
 0x2f0   :  { %v2808_v29 = vsel %vm2807_vm5, %v6904_v21, %v2806_v49  ;;  %6010 = vrcp.f32 %v2899_v37  ;;  %v6981_v11 = vpop.eup %5992  ;;  %vm2823_vm14 = vcmp.eq.f32.partialorder %v6941_v46, 0.0  ;;  %v2824_v49 = vand.u32 2147483648, %v6941_v46 }
 0x2f1   :  { %v2811_v5 = vsel %vm2809_vm6, %v2810_v61, %v2808_v29  ;;  %6012 = vrsqrt.f32 %v6963_v17  ;;  %v2815_v21 = vsel %vm2814_vm7, %v6908_v50, %v2813_v8  ;;  %vm2828_vm15 = vcmp.eq.f32.partialorder %v6947_v47, inf }
 0x2f2   :  { %v6987_v58 = vpop.xlane.xlu0 %2766  ;;  %v5995_v59 = vpop.eup %5994  ;;  %v2947_v7 = vmax.f32 %v2811_v5, 1e-08  ;;  %6014 = vrsqrt.f32 %v6969_v18  ;;  %v2818_v38 = vsel %vm2816_vm8, %v2817_v2, %v2815_v21  ;;  %vm2830_vm0 = vcmp.eq.f32.partialorder %v6947_v47, 0.0 }
 0x2f3   :  { %v6994_v61 = vpop.xlane.xlu1 %2768  ;;  %v5997_v37 = vpop.eup %5996  ;;  %6016 = vrcp.f32 %v2900_v1  ;;  %v2831_v5 = vand.u32 2147483648, %v6947_v47  ;;  %vm2675_vm1 = vcmp.eq.f32.partialorder %v6963_v17, inf  ;;  %v2678_v50 = vand.u32 2147483648, %v6963_v17 }
 0x2f4   :  { %v5999_v6 = vpop.eup %5998  ;;  %v2660_v29 = vmul.f32 %v5997_v37, %v6920_v20  ;;  %6018 = vrsqrt.f32 %v6987_v58  ;;  %v2948_v37 = vmax.f32 %v2818_v38, 1e-08  ;;  %vm2677_vm2 = vcmp.eq.f32.partialorder %v6963_v17, 0.0 }
 0x2f5   :  { %v7004_v8 = vpop.eup %6000  ;;  %v2667_v1 = vmul.f32 %v5999_v6, %v6925_v30  ;;  %6020 = vrsqrt.f32 %v6994_v61  ;;  %vm2682_vm3 = vcmp.eq.f32.partialorder %v6969_v18, inf  ;;  %vm2684_vm5 = vcmp.eq.f32.partialorder %v6969_v18, 0.0 }
 0x2f6   :  { %v7010_v2 = vpop.xlane.xlu0 %2610  ;;  %v7012_v21 = vpop.eup %6002  ;;  %6022 = vrcp.f32 %v2947_v7  ;;  %v2662_v48 = vsel %vm2661_vm9, %v6920_v20, %v2660_v29  ;;  %v2685_v15 = vand.u32 2147483648, %v6969_v18  ;;  %vm2835_vm6 = vcmp.eq.f32.partialorder %v6987_v58, inf }
 0x2f7   :  { %v6005_v6 = vpop.eup %6004  ;;  %v2665_v53 = vsel %vm2663_vm10, %v2664_v12, %v2662_v48  ;;  %v2669_v45 = vsel %vm2668_vm11, %v6925_v30, %v2667_v1  ;;  %6024 = vrsqrt.f32 %v7010_v2  ;;  %vm2837_vm7 = vcmp.eq.f32.partialorder %v6987_v58, 0.0  ;;  %v7036_v16 = vpop.xlane.xlu1 %2612 }
 0x2f8   :  { %v6007_v7 = vpop.eup %6006  ;;  %v2672_v38 = vsel %vm2670_vm12, %v2671_v19, %v2669_v45  ;;  %v2820_v29 = vmul.f32 %v6005_v6, %v6941_v46  ;;  %v2901_v48 = vmax.f32 %v2665_v53, 1e-08  ;;  %v2838_v1 = vand.u32 2147483648, %v6987_v58 }
 0x2f9   :  { %v7031_v20 = vpop.eup %6008  ;;  %v2827_v12 = vmul.f32 %v6007_v7, %v6947_v47  ;;  %6026 = vrcp.f32 %v2948_v37  ;;  %v2902_v45 = vmax.f32 %v2672_v38, 1e-08  ;;  %vm2842_vm8 = vcmp.eq.f32.partialorder %v6994_v61, inf }
 0x2fa   :  { %v7038_v60 = vpop.eup %6010  ;;  %v2822_v30 = vsel %vm2821_vm13, %v6941_v46, %v2820_v29  ;;  %vm2844_vm9 = vcmp.eq.f32.partialorder %v6994_v61, 0.0  ;;  %v2845_v7 = vand.u32 2147483648, %v6994_v61  ;;  %6028 = vrsqrt.f32 %v7036_v16 }
 0x2fb   :  { %v6013_v19 = vpop.eup %6012  ;;  %v2825_v53 = vsel %vm2823_vm14, %v2824_v49, %v2822_v30  ;;  %v2829_v6 = vsel %vm2828_vm15, %v6947_v47, %v2827_v12  ;;  %6030 = vrcp.f32 %v2901_v48  ;;  %v7059_v49 = vmul.f32 %v5995_v59, %v6751_v13 }
 0x2fc   :  { %v6015_v37 = vpop.eup %6014  ;;  %v2949_v38 = vmax.f32 %v2825_v53, 1e-08  ;;  %v2832_v52 = vsel %vm2830_vm0, %v2831_v5, %v2829_v6  ;;  %v2674_v29 = vmul.f32 %v6013_v19, %v6963_v17  ;;  %v2915_v12 = vmul.f32 %v6981_v11, %v6747_v9  ;;  %v7068_v5 = vpop.xlane.xlu0 %2770 }
 0x2fd   :  { %v7055_v22 = vpop.eup %6016  ;;  %v2681_v46 = vmul.f32 %v6015_v37, %v6969_v18  ;;  %6032 = vrcp.f32 %v2902_v45  ;;  %vm2689_vm10 = vcmp.eq.f32.partialorder %v7010_v2, inf  ;;  %vm2691_vm11 = vcmp.eq.f32.partialorder %v7010_v2, 0.0 }
 0x2fe   :  { %v6019_v30 = vpop.eup %6018  ;;  %v2676_v47 = vsel %vm2675_vm1, %v6963_v17, %v2674_v29  ;;  %v2950_v19 = vmax.f32 %v2832_v52, 1e-08  ;;  %6034 = vrcp.f32 %v2949_v38  ;;  %v3019_v6 = vand.u32 4294901760, %v7059_v49  ;;  %v7082_v52 = vpop.xlane.xlu1 %2772 }
 0x2ff   :  { %v6021_v48 = vpop.eup %6020  ;;  %v2679_v13 = vsel %vm2677_vm2, %v2678_v50, %v2676_v47  ;;  %v2683_v9 = vsel %vm2682_vm3, %v6969_v18, %v2681_v46  ;;  %v2834_v11 = vmul.f32 %v6019_v30, %v6987_v58  ;;  %v3022_v29 = vand.u32 4294901760, %v2915_v12 }
 0x300   :  { %v7076_v59 = vpop.eup %6022  ;;  %v2686_v45 = vsel %vm2684_vm5, %v2685_v15, %v2683_v9  ;;  %v2841_v53 = vmul.f32 %v6021_v48, %v6994_v61  ;;  %v2903_v50 = vmax.f32 %v2679_v13, 1e-08  ;;  %6036 = vrsqrt.f32 %v7068_v5 }
 0x301   :  { %v6025_v17 = vpop.eup %6024  ;;  %v2836_v37 = vsel %vm2835_vm6, %v6987_v58, %v2834_v11  ;;  %v2904_v46 = vmax.f32 %v2686_v45, 1e-08  ;;  %6038 = vrcp.f32 %v2950_v19  ;;  %v2692_v47 = vand.u32 2147483648, %v7010_v2  ;;  %v7109_v19 = vpop.xlane.xlu0 %2614 }
 0x302   :  { %v2839_v18 = vsel %vm2837_vm7, %v2838_v1, %v2836_v37  ;;  %v2843_v15 = vsel %vm2842_vm8, %v6994_v61, %v2841_v53  ;;  %v2688_v38 = vmul.f32 %v6025_v17, %v7010_v2  ;;  %v7097_v48 = vpack.c.bf16 %v3022_v29, %v3019_v6 }
 0x303   :  { %v2846_v30 = vsel %vm2844_vm9, %v2845_v7, %v2843_v15  ;;  %v7099_v13 = vpop.eup %6026  ;;  %v2951_v9 = vmax.f32 %v2839_v18, 1e-08  ;;  %v7105_v1 = vsub.f32 %v7059_v49, %v3019_v6  ;;  %v7107_v11 = vsub.f32 %v2915_v12, %v3022_v29  ;;  %v7117_v12 = vpop.xlane.xlu1 %2616 }
 0x304   :  { %8077 = vst [vmem:[#allocation15_spill] sm:$0xff] %v7097_v48  ;;  %v2690_v58 = vsel %vm2689_vm10, %v7010_v2, %v2688_v38  ;;  %6040 = vrcp.f32 %v2903_v50  ;;  %vm2696_vm12 = vcmp.eq.f32.partialorder %v7036_v16, inf  ;;  %5493 = vmatpush3.bf16.xpose.msra.mxu0 %v7097_v48  ;;  %vm4319_vm13 = vcmask 1040384   ;;  %v6029_v7 = vpop.eup %6028 }
 0x305   :  { %v2693_v61 = vsel %vm2691_vm11, %v2692_v47, %v2690_v58  ;;  %6042 = vrcp.f32 %v2904_v46  ;;  %v2952_v45 = vmax.f32 %v2846_v30, 1e-08  ;;  %vm2698_vm14 = vcmp.eq.f32.partialorder %v7036_v16, 0.0  ;;  %v7120_v17 = vpop.eup %6030  ;;  %v7143_v30 = vpop.xlane.xlu0 %2774 }
 0x306   :  { %v2699_v53 = vand.u32 2147483648, %v7036_v16  ;;  %v8078_v6 = vmov 0.0|0.0   ;;  %v2695_v2 = vmul.f32 %v6029_v7, %v7036_v16  ;;  %6044 = vrsqrt.f32 %v7082_v52 }
 0x307   :  { %5494 = vmatprep.subr.bf16.mxu0 %v8078_v6  ;;  %v2961_v50 = vmul.f32 %v7012_v21, %v6753_v14  ;;  %v2963_v37 = vmul.f32 %v6975_v56, %v6749_v10  ;;  %v7128_v29 = vpop.eup %6032  ;;  %6046 = vrcp.f32 %v2951_v9  ;;  %v2905_v46 = vmax.f32 %v2693_v61, 1e-08 }
 0x308   :  { %vm2849_vm15 = vcmp.eq.f32.partialorder %v7068_v5, inf  ;;  %vm2851_vm0 = vcmp.eq.f32.partialorder %v7068_v5, 0.0  ;;  %v2697_v18 = vsel %vm2696_vm12, %v7036_v16, %v2695_v2  ;;  %6048 = vrsqrt.f32 %v7109_v19  ;;  %v7136_v14 = vpop.eup %6034 }
 0x309   :  { %v3661_v15 = vand.u32 4294901760, %v2961_v50  ;;  %v3664_v38 = vand.u32 4294901760, %v2963_v37  ;;  %v2700_v10 = vsel %vm2698_vm14, %v2699_v53, %v2697_v18  ;;  %v2852_v56 = vand.u32 2147483648, %v7068_v5  ;;  %v7155_v53 = vpop.xlane.xlu1 %2776 }
 0x30a   :  { %v4315_v21 = vmul.f32 %v2961_v50, %v7059_v49  ;;  %6050 = vrsqrt.f32 %v7117_v12  ;;  %v6037_v47 = vpop.eup %6036  ;;  %vm2856_vm1 = vcmp.eq.f32.partialorder %v7082_v52, inf  ;;  %vm2858_vm2 = vcmp.eq.f32.partialorder %v7082_v52, 0.0 }
 0x30b   :  { %6052 = vrcp.f32 %v2952_v45  ;;  %v7146_v9 = vpack.c.bf16 %v3664_v38, %v3661_v15  ;;  %v7148_v58 = vsub.f32 %v2961_v50, %v3661_v15  ;;  %v7150_v61 = vsub.f32 %v2963_v37, %v3664_v38  ;;  %v7157_v2 = vpop.eup %6038 }
 0x30c   :  { %6054 = vrcp.f32 %v2905_v46  ;;  %v2848_v16 = vmul.f32 %v6037_v47, %v7068_v5  ;;  %v2859_v49 = vand.u32 2147483648, %v7082_v52  ;;  %v4317_v7 = vrot.slane %v4315_v21, 3  ;;  %v7183_v21 = vpop.xlane.xlu0 %2618 }
 0x30d   :  { %8079 = vst [vmem:[#allocation16_spill] sm:$0xff] %v7146_v9  ;;  %v2906_v45 = vmax.f32 %v2700_v10, 1e-08  ;;  %5637 = vmatpush3.bf16.xpose.msra.mxu1 %v7146_v9  ;;  %vm2703_vm3 = vcmp.eq.f32.partialorder %v7109_v19, inf  ;;  %v2917_v50 = vmul.f32 %v7004_v8, %v6763_v35  ;;  %v2919_v37 = vmul.f32 %v7038_v60, %v6759_v31  ;;  %v7199_v48 = vpop.xlane.xlu1 %2620 }
 0x30e   :  { %v2850_v46 = vsel %vm2849_vm15, %v7068_v5, %v2848_v16  ;;  %vm2705_vm5 = vcmp.eq.f32.partialorder %v7109_v19, 0.0  ;;  %v4320_v18 = vsel %vm4319_vm13, %v4317_v7, 0.0  ;;  %6056 = vrsqrt.f32 %v7143_v30  ;;  %5638 = vmatprep.subr.bf16.mxu1 %v8078_v6  ;;  %v7172_v15 = vpop.eup %6040 }
 0x30f   :  { %v2706_v38 = vand.u32 2147483648, %v7109_v19  ;;  %4321 = vadd.xlane.f32.xlu0 %v4320_v18  ;;  %vm2710_vm6 = vcmp.eq.f32.partialorder %v7117_v12, inf  ;;  %v3025_v60 = vand.u32 4294901760, %v2917_v50  ;;  %v3028_v31 = vand.u32 4294901760, %v2919_v37  ;;  %v7176_v35 = vpop.eup %6042 }
 0x310   :  { %v2853_v8 = vsel %vm2851_vm0, %v2852_v56, %v2850_v46  ;;  %vm2712_vm7 = vcmp.eq.f32.partialorder %v7117_v12, 0.0  ;;  %v2713_v10 = vand.u32 2147483648, %v7117_v12  ;;  %6058 = vrsqrt.f32 %v7155_v53  ;;  %v6045_v47 = vpop.eup %6044 }
 0x311   :  { %6060 = vrcp.f32 %v2906_v45  ;;  %v7185_v16 = vpack.c.bf16 %v3028_v31, %v3025_v60  ;;  %v7187_v7 = vsub.f32 %v2917_v50, %v3025_v60  ;;  %v7189_v18 = vsub.f32 %v2919_v37, %v3028_v31  ;;  %v7191_v9 = vpop.eup %6046 }
 0x312   :  { %v2855_v5 = vmul.f32 %v6045_v47, %v7082_v52  ;;  %vm2863_vm8 = vcmp.eq.f32.partialorder %v7143_v30, inf  ;;  %v2965_v56 = vmul.f32 %v7031_v20, %v6765_v36  ;;  %v2967_v46 = vmul.f32 %v7076_v59, %v6761_v32  ;;  %v6049_v45 = vpop.eup %6048 }
 0x313   :  { %8080 = vst [vmem:[#allocation17_spill] sm:$0xff] %v7185_v16  ;;  %8081 = vst [vmem:[#allocation18_spill] sm:$0xff] %v7187_v7  ;;  %v2953_v33 = vmax.f32 %v2853_v8, 1e-08  ;;  %5496 = vmatpush3.bf16.xpose.msra.mxu0 %v7185_v16  ;;  %vm2865_vm9 = vcmp.eq.f32.partialorder %v7143_v30, 0.0  ;;  %v2866_v50 = vand.u32 2147483648, %v7143_v30  ;;  %6062 = vrsqrt.f32 %v7183_v21  ;;  %v7226_v7 = vpop.xlane.xlu0 %2778 }
 0x314   :  { %8082 = vst [vmem:[#allocation19_spill] sm:$0xff] %v7189_v18  ;;  %v6051_v37 = vpop.eup %6050  ;;  %v2857_v36 = vsel %vm2856_vm1, %v7082_v52, %v2855_v5  ;;  %v2702_v20 = vmul.f32 %v6049_v45, %v7109_v19  ;;  %v3667_v32 = vand.u32 4294901760, %v2965_v56  ;;  %v3670_v59 = vand.u32 4294901760, %v2967_v46  ;;  %5497 = vmatprep.subr.bf16.mxu0 %v8078_v6 }
 0x315   :  { %v7210_v60 = vpop.eup %6052  ;;  %v2860_v31 = vsel %vm2858_vm2, %v2859_v49, %v2857_v36  ;;  %v2709_v8 = vmul.f32 %v6051_v37, %v7117_v12  ;;  %vm2870_vm10 = vcmp.eq.f32.partialorder %v7155_v53, inf  ;;  %6064 = vrsqrt.f32 %v7199_v48 }
 0x316   :  { %v7217_v47 = vpop.eup %6054  ;;  %v2954_v5 = vmax.f32 %v2860_v31, 1e-08  ;;  %v2704_v45 = vsel %vm2703_vm3, %v7109_v19, %v2702_v20  ;;  %v7222_v16 = vpack.c.bf16 %v3670_v59, %v3667_v32  ;;  %v7224_v18 = vsub.f32 %v2965_v56, %v3667_v32 }
 0x317   :  { %v2707_v52 = vsel %vm2705_vm5, %v2706_v38, %v2704_v45  ;;  %v2711_v49 = vsel %vm2710_vm6, %v7117_v12, %v2709_v8  ;;  %vm2872_vm11 = vcmp.eq.f32.partialorder %v7155_v53, 0.0  ;;  %v7234_v37 = vsub.f32 %v2967_v46, %v3670_v59  ;;  %v7249_v59 = vpop.xlane.xlu1 %2780 }
 0x318   :  { %8083 = vst [vmem:[#allocation20_spill] sm:$0xff] %v7222_v16  ;;  %v6057_v36 = vpop.eup %6056  ;;  %6066 = vrcp.f32 %v2953_v33  ;;  %v2907_v20 = vmax.f32 %v2707_v52, 1e-08  ;;  %v2714_v56 = vsel %vm2712_vm7, %v2713_v10, %v2711_v49  ;;  %v2873_v32 = vand.u32 2147483648, %v7155_v53  ;;  %5640 = vmatpush3.bf16.xpose.msra.mxu1 %v7222_v16 }
 0x319   :  { %v2862_v19 = vmul.f32 %v6057_v36, %v7143_v30  ;;  %vm2717_vm12 = vcmp.eq.f32.partialorder %v7183_v21, inf  ;;  %v2921_v38 = vmul.f32 %v7055_v22, %v6775_v62  ;;  %v2923_v46 = vmul.f32 %v7120_v17, %v6773_v57  ;;  %5641 = vmatprep.subr.bf16.mxu1 %v8078_v6 }
 0x31a   :  { %v6059_v33 = vpop.eup %6058  ;;  %6068 = vrcp.f32 %v2954_v5  ;;  %v2908_v12 = vmax.f32 %v2714_v56, 1e-08  ;;  %vm2719_vm13 = vcmp.eq.f32.partialorder %v7183_v21, 0.0  ;;  %v2720_v10 = vand.u32 2147483648, %v7183_v21  ;;  %v7261_v5 = vpop.xlane.xlu0 %2622 }
 0x31b   :  { %v7251_v31 = vpop.eup %6060  ;;  %6070 = vrcp.f32 %v2907_v20  ;;  %v2864_v62 = vsel %vm2863_vm8, %v7143_v30, %v2862_v19  ;;  %v2869_v57 = vmul.f32 %v6059_v33, %v7155_v53  ;;  %vm2724_vm14 = vcmp.eq.f32.partialorder %v7199_v48, inf }
 0x31c   :  { %v2867_v22 = vsel %vm2865_vm9, %v2866_v50, %v2864_v62  ;;  %v3031_v17 = vand.u32 4294901760, %v2921_v38  ;;  %v3034_v8 = vand.u32 4294901760, %v2923_v46  ;;  %6072 = vrsqrt.f32 %v7226_v7 }
 0x31d   :  { %v6063_v45 = vpop.eup %6062  ;;  %v2955_v52 = vmax.f32 %v2867_v22, 1e-08  ;;  %v2871_v49 = vsel %vm2870_vm10, %v7155_v53, %v2869_v57  ;;  %vm2726_vm15 = vcmp.eq.f32.partialorder %v7199_v48, 0.0  ;;  %6074 = vrsqrt.f32 %v7249_v59 }
 0x31e   :  { %6076 = vrcp.f32 %v2908_v12  ;;  %v2874_v30 = vsel %vm2872_vm11, %v2873_v32, %v2871_v49  ;;  %v2716_v50 = vmul.f32 %v6063_v45, %v7183_v21  ;;  %v7271_v36 = vpack.c.bf16 %v3034_v8, %v3031_v17 }
 0x31f   :  { %v6065_v20 = vpop.eup %6064  ;;  %6078 = vrcp.f32 %v2955_v52  ;;  %v2956_v56 = vmax.f32 %v2874_v30, 1e-08  ;;  %v2727_v19 = vand.u32 2147483648, %v7199_v48  ;;  %v2880_v33 = vand.u32 2147483648, %v7226_v7 }
 0x320   :  { %8084 = vst [vmem:[#allocation21_spill] sm:$0xff] %v7271_v36  ;;  %v2718_v62 = vsel %vm2717_vm12, %v7183_v21, %v2716_v50  ;;  %v2723_v12 = vmul.f32 %v6065_v20, %v7199_v48  ;;  %5499 = vmatpush3.bf16.xpose.msra.mxu0 %v7271_v36  ;;  %vm2877_vm0 = vcmp.eq.f32.partialorder %v7226_v7, inf  ;;  %v2969_v53 = vmul.f32 %v7099_v13, %v6777_v63  ;;  %v7299_v21 = vpop.xlane.xlu0 %2782 }
 0x321   :  { %v2971_v32 = vmul.f32 %v7136_v14, %v6771_v55  ;;  %6080 = vrcp.f32 %v2956_v56  ;;  %v2721_v57 = vsel %vm2719_vm13, %v2720_v10, %v2718_v62  ;;  %v7287_v22 = vsub.f32 %v2921_v38, %v3031_v17  ;;  %5500 = vmatprep.subr.bf16.mxu0 %v8078_v6 }
 0x322   :  { %v7289_v45 = vsub.f32 %v2923_v46, %v3034_v8  ;;  %vm2879_vm1 = vcmp.eq.f32.partialorder %v7226_v7, 0.0  ;;  %vm2884_vm2 = vcmp.eq.f32.partialorder %v7249_v59, inf  ;;  %v7294_v52 = vpop.eup %6066  ;;  %v2909_v63 = vmax.f32 %v2721_v57, 1e-08 }
 0x323   :  { %v2725_v55 = vsel %vm2724_vm14, %v7199_v48, %v2723_v12  ;;  %v3673_v13 = vand.u32 4294901760, %v2969_v53  ;;  %v3676_v14 = vand.u32 4294901760, %v2971_v32  ;;  %vm2886_vm3 = vcmp.eq.f32.partialorder %v7249_v59, 0.0 }
 0x324   :  { %v2728_v38 = vsel %vm2726_vm15, %v2727_v19, %v2725_v55  ;;  %6082 = vrsqrt.f32 %v7261_v5  ;;  %v2925_v46 = vmul.f32 %v7128_v29, %v6787_v27  ;;  %v7307_v10 = vpop.eup %6068  ;;  %v2887_v8 = vand.u32 2147483648, %v7249_v59 }
 0x325   :  { %6084 = vrcp.f32 %v2909_v63  ;;  %v2910_v17 = vmax.f32 %v2728_v38, 1e-08  ;;  %v7310_v49 = vpack.c.bf16 %v3676_v14, %v3673_v13  ;;  %v6071_v30 = vpop.eup %6070  ;;  %v2734_v50 = vand.u32 2147483648, %v7261_v5 }
 0x326   :  { %v2927_v48 = vmul.f32 %v7172_v15, %v6785_v24  ;;  %v3037_v20 = vand.u32 4294901760, %v2925_v46  ;;  %6086 = vrsqrt.f32 %v7299_v21  ;;  %v6073_v56 = vpop.eup %6072  ;;  %v7317_v27 = vsub.f32 %v2969_v53, %v3673_v13 }
 0x327   :  { %8085 = vst [vmem:[#allocation22_spill] sm:$0xff] %v7310_v49  ;;  %6088 = vrcp.f32 %v2910_v17  ;;  %5643 = vmatpush3.bf16.xpose.msra.mxu1 %v7310_v49  ;;  %v7319_v29 = vsub.f32 %v2971_v32, %v3676_v14  ;;  %v2894_v19 = vand.u32 2147483648, %v7299_v21  ;;  %v6075_v62 = vpop.eup %6074  ;;  %v2876_v12 = vmul.f32 %v6073_v56, %v7226_v7 }
 0x328   :  { %vm2731_vm5 = vcmp.eq.f32.partialorder %v7261_v5, inf  ;;  %v3040_v57 = vand.u32 4294901760, %v2927_v48  ;;  %v7324_v24 = vsub.f32 %v2925_v46, %v3037_v20  ;;  %5644 = vmatprep.subr.bf16.mxu1 %v8078_v6  ;;  %v2973_v15 = vmul.f32 %v7157_v2, %v6789_v28  ;;  %v7329_v63 = vpop.eup %6076 }
 0x329   :  { %v2883_v53 = vmul.f32 %v6075_v62, %v7249_v59  ;;  %vm2733_vm6 = vcmp.eq.f32.partialorder %v7261_v5, 0.0  ;;  %v2975_v32 = vmul.f32 %v7191_v9, %v6783_v23  ;;  %v2929_v55 = vmul.f32 %v7176_v35, %v6799_v3  ;;  %v6079_v14 = vpop.eup %6078 }
 0x32a   :  { %v2931_v13 = vmul.f32 %v7217_v47, %v6797_v54  ;;  %v2878_v28 = vsel %vm2877_vm0, %v7226_v7, %v2876_v12  ;;  %v7342_v2 = vpack.c.bf16 %v3040_v57, %v3037_v20  ;;  %v7344_v38 = vsub.f32 %v2927_v48, %v3040_v57 }
 0x32b   :  { %vm2891_vm7 = vcmp.eq.f32.partialorder %v7299_v21, inf  ;;  %v3679_v46 = vand.u32 4294901760, %v2973_v15  ;;  %v2881_v23 = vsel %vm2879_vm1, %v2880_v33, %v2878_v28  ;;  %v2885_v3 = vsel %vm2884_vm2, %v7249_v59, %v2883_v53  ;;  %v6081_v35 = vpop.eup %6080 }
 0x32c   :  { %8086 = vst [vmem:[#allocation23_spill] sm:$0xff] %v7342_v2  ;;  %vm2893_vm8 = vcmp.eq.f32.partialorder %v7299_v21, 0.0  ;;  %v3682_v54 = vand.u32 4294901760, %v2975_v32  ;;  %v3043_v9 = vand.u32 4294901760, %v2929_v55  ;;  %v2957_v47 = vmax.f32 %v2881_v23, 1e-08  ;;  %5502 = vmatpush3.bf16.xpose.msra.mxu0 %v7342_v2 }
 0x32d   :  { %v2888_v17 = vsel %vm2886_vm3, %v2887_v8, %v2885_v3  ;;  %v7356_v48 = vsub.f32 %v2973_v15, %v3679_v46  ;;  %v3046_v20 = vand.u32 4294901760, %v2931_v13  ;;  %5503 = vmatprep.subr.bf16.mxu0 %v8078_v6  ;;  %v2977_v8 = vmul.f32 %v7210_v60, %v6801_v4 }
 0x32e   :  { %v2958_v7 = vmax.f32 %v2888_v17, 1e-08  ;;  %v7358_v33 = vpack.c.bf16 %v3682_v54, %v3679_v46  ;;  %v7360_v56 = vsub.f32 %v2975_v32, %v3682_v54  ;;  %v7363_v62 = vsub.f32 %v2929_v55, %v3043_v9  ;;  %v6083_v12 = vpop.eup %6082 }
 0x32f   :  { %6090 = vrcp.f32 %v2957_v47  ;;  %v7365_v57 = vpack.c.bf16 %v3046_v20, %v3043_v9  ;;  %v7367_v59 = vsub.f32 %v2931_v13, %v3046_v20  ;;  %v6085_v15 = vpop.eup %6084  ;;  %v2730_v53 = vmul.f32 %v6083_v12, %v7261_v5 }
 0x330   :  { %8087 = vst [vmem:[#allocation24_spill] sm:$0xff] %v7358_v33  ;;  %6092 = vrcp.f32 %v2958_v7  ;;  %5646 = vmatpush3.bf16.xpose.msra.mxu1 %v7358_v33  ;;  %v2979_v32 = vmul.f32 %v7294_v52, %v6795_v51  ;;  %v2933_v55 = vmul.f32 %v7251_v31, %v6811_v43  ;;  %v6087_v28 = vpop.eup %6086  ;;  %v3685_v13 = vand.u32 4294901760, %v2977_v8 }
 0x331   :  { %8088 = vst [vmem:[#allocation25_spill] sm:$0xff] %v7365_v57  ;;  %5647 = vmatprep.subr.bf16.mxu1 %v8078_v6  ;;  %v2935_v46 = vmul.f32 %v6071_v30, %v6809_v40  ;;  %v2981_v4 = vmul.f32 %v7307_v10, %v6813_v44  ;;  %v2983_v60 = vmul.f32 %v6079_v14, %v6807_v39  ;;  %v6089_v23 = vpop.eup %6088 }
 0x332   :  { %v2732_v3 = vsel %vm2731_vm5, %v7261_v5, %v2730_v53  ;;  %v2890_v51 = vmul.f32 %v6087_v28, %v7299_v21  ;;  %v3688_v52 = vand.u32 4294901760, %v2979_v32  ;;  %v3049_v43 = vand.u32 4294901760, %v2933_v55 }
 0x333   :  { %v2735_v31 = vsel %vm2733_vm6, %v2734_v50, %v2732_v3  ;;  %v7390_v40 = vsub.f32 %v2977_v8, %v3685_v13  ;;  %v3052_v30 = vand.u32 4294901760, %v2935_v46  ;;  %v3691_v44 = vand.u32 4294901760, %v2981_v4 }
 0x334   :  { %v2911_v10 = vmax.f32 %v2735_v31, 1e-08  ;;  %v2892_v39 = vsel %vm2891_vm7, %v7299_v21, %v2890_v51  ;;  %v7395_v14 = vpack.c.bf16 %v3688_v52, %v3685_v13  ;;  %v7397_v54 = vsub.f32 %v2979_v32, %v3688_v52  ;;  %5505 = vmatpush3.bf16.xpose.msra.mxu0 %v7365_v57 }
 0x335   :  { %v2895_v9 = vsel %vm2893_vm8, %v2894_v19, %v2892_v39  ;;  %v7404_v5 = vpack.c.bf16 %v3052_v30, %v3049_v43  ;;  %v7406_v50 = vsub.f32 %v2933_v55, %v3049_v43  ;;  %v7408_v47 = vsub.f32 %v2935_v46, %v3052_v30  ;;  %5506 = vmatprep.subr.bf16.mxu0 %v8078_v6 }
 0x336   :  { %8089 = vst [vmem:[#allocation26_spill] sm:$0xff] %v7395_v14  ;;  %6094 = vrcp.f32 %v2911_v10  ;;  %v2959_v17 = vmax.f32 %v2895_v9, 1e-08  ;;  %v3694_v20 = vand.u32 4294901760, %v2983_v60  ;;  %v7411_v7 = vsub.f32 %v2981_v4, %v3691_v44  ;;  %v8093_v10 = vld [vmem:[#allocation18_spill] sm:$0xff] }
 0x337   :  { %8090 = vst [vmem:[#allocation27_spill] sm:$0xff] %v7404_v5  ;;  %v2937_v12 = vmul.f32 %v7329_v63, %v6823_v41  ;;  %v2939_v21 = vmul.f32 %v6085_v15, %v6821_v26  ;;  %v2985_v19 = vmul.f32 %v6081_v35, %v6825_v42  ;;  %v7418_v8 = vmul.f32 %v6089_v23, %v6835_v0 }
 0x338   :  { %6096 = vrcp.f32 %v2959_v17  ;;  %5649 = vmatpush3.bf16.xpose.msra.mxu1 %v7395_v14  ;;  %v7421_v53 = vpack.c.bf16 %v3694_v20, %v3691_v44  ;;  %v7423_v32 = vsub.f32 %v2983_v60, %v3694_v20  ;;  %v8017_v55 = vand.u32 4294901760, %v7105_v1  ;;  %v8095_v20 = vld [vmem:[#allocation19_spill] sm:$0xff] }
 0x339   :  { %v6091_v28 = vpop.eup %6090  ;;  %5650 = vmatprep.subr.bf16.mxu1 %v8078_v6  ;;  %v3055_v41 = vand.u32 4294901760, %v2937_v12  ;;  %v3058_v63 = vand.u32 4294901760, %v2939_v21  ;;  %v3697_v26 = vand.u32 4294901760, %v2985_v19  ;;  %v3061_v42 = vand.u32 4294901760, %v7418_v8 }
 0x33a   :  { %8091 = vst [vmem:[#allocation28_spill] sm:$0xff] %v7421_v53  ;;  %v6093_v35 = vpop.eup %6092  ;;  %v2987_v0 = vmul.f32 %v6091_v28, %v6819_v25  ;;  %v3113_v15 = vsub.f32 %v7105_v1, %v8017_v55  ;;  %v8016_v13 = vand.u32 4294901760, %v7107_v11  ;;  %v8014_v46 = vand.u32 4294901760, %v7148_v58 }
 0x33b   :  { %v7434_v4 = vpack.c.bf16 %v3058_v63, %v3055_v41  ;;  %v7436_v60 = vsub.f32 %v2937_v12, %v3055_v41  ;;  %v7438_v23 = vsub.f32 %v2939_v21, %v3058_v63  ;;  %v7440_v3 = vsub.f32 %v2985_v19, %v3697_v26 }
 0x33c   :  { %v3700_v51 = vand.u32 4294901760, %v2987_v0  ;;  %v7443_v52 = vsub.f32 %v7418_v8, %v3061_v42  ;;  %v2989_v25 = vmul.f32 %v6093_v35, %v6837_v34  ;;  %v3114_v43 = vand.u32 4294901760, %v3113_v15  ;;  %5508 = vmatpush3.bf16.xpose.msra.mxu0 %v7404_v5  ;;  %v8096_v15 = vld [vmem:[#allocation14_spill] sm:$0xff] }
 0x33d   :  { %8092 = vst [vmem:[#allocation29_spill] sm:$0xff] %v7434_v4  ;;  %v3120_v31 = vsub.f32 %v7107_v11, %v8016_v13  ;;  %v3755_v30 = vsub.f32 %v7148_v58, %v8014_v46  ;;  %v8013_v44 = vand.u32 4294901760, %v7150_v61  ;;  %v8012_v39 = vand.u32 4294901760, %v8093_v10  ;;  %5509 = vmatprep.subr.bf16.mxu0 %v8078_v6 }
 0x33e   :  { %v7456_v9 = vpack.c.bf16 %v3700_v51, %v3697_v26  ;;  %v7458_v34 = vsub.f32 %v2987_v0, %v3700_v51  ;;  %v3703_v17 = vand.u32 4294901760, %v2989_v25  ;;  %v8015_v12 = vand.u32 4294901760, %v8095_v20 }
 0x33f   :  { %v3121_v21 = vand.u32 4294901760, %v3120_v31  ;;  %v3756_v19 = vand.u32 4294901760, %v3755_v30  ;;  %v3762_v8 = vsub.f32 %v7150_v61, %v8013_v44  ;;  %v3127_v28 = vsub.f32 %v8093_v10, %v8012_v39 }
 0x340   :  { %8094 = vst [vmem:[#allocation18_spill] sm:$0xff] %v7456_v9  ;;  %v6095_v41 = vpop.eup %6094  ;;  %5652 = vmatpush3.bf16.xpose.msra.mxu1 %v7421_v53  ;;  %v7468_v63 = vsub.f32 %v2989_v25, %v3703_v17  ;;  %v3134_v26 = vsub.f32 %v8095_v20, %v8015_v12  ;;  %v8023_v35 = vand.u32 4294901760, %v7224_v18  ;;  %v8022_v0 = vand.u32 4294901760, %v7234_v37  ;;  %v8097_v53 = vld [vmem:[#allocation13_spill] sm:$0xff] }
 0x341   :  { %5653 = vmatprep.subr.bf16.mxu1 %v8078_v6  ;;  %v2943_v51 = vmul.f32 %v6095_v41, %v8096_v15  ;;  %v7477_v31 = vpack.c.bf16 %v3121_v21, %v3114_v43  ;;  %v3763_v30 = vand.u32 4294901760, %v3762_v8  ;;  %v3128_v39 = vand.u32 4294901760, %v3127_v28 }
 0x342   :  { %v6097_v44 = vpop.eup %6096  ;;  %v3135_v46 = vand.u32 4294901760, %v3134_v26  ;;  %v3769_v25 = vsub.f32 %v7224_v18, %v8023_v35  ;;  %v3776_v12 = vsub.f32 %v7234_v37, %v8022_v0  ;;  %v8028_v13 = vand.u32 4294901760, %v7287_v22 }
 0x343   :  { %v3064_v55 = vand.u32 4294901760, %v2943_v51  ;;  %v2991_v5 = vmul.f32 %v6097_v44, %v8097_v53  ;;  %v7487_v41 = vpack.c.bf16 %v3763_v30, %v3756_v19  ;;  %v8026_v43 = vand.u32 4294901760, %v7289_v45 }
 0x344   :  { %v7490_v21 = vpack.c.bf16 %v3135_v46, %v3128_v39  ;;  %v3770_v8 = vand.u32 4294901760, %v3769_v25  ;;  %v3777_v28 = vand.u32 4294901760, %v3776_v12  ;;  %v3141_v26 = vsub.f32 %v7287_v22, %v8028_v13  ;;  %5511 = vmatpush3.bf16.xpose.msra.mxu0 %v7434_v4 }
 0x345   :  { %v7496_v15 = vpack.c.bf16 %v3064_v55, %v3061_v42  ;;  %v7498_v0 = vsub.f32 %v2943_v51, %v3064_v55  ;;  %v3706_v35 = vand.u32 4294901760, %v2991_v5  ;;  %v3148_v53 = vsub.f32 %v7289_v45, %v8026_v43  ;;  %5512 = vmatprep.subr.bf16.mxu0 %v8078_v6 }
 0x346   :  { %v7504_v46 = vpack.c.bf16 %v3777_v28, %v3770_v8  ;;  %v3142_v44 = vand.u32 4294901760, %v3141_v26  ;;  %v8024_v39 = vand.u32 4294901760, %v7317_v27  ;;  %v8025_v12 = vand.u32 4294901760, %v7319_v29 }
 0x347   :  { %8098 = vst [vmem:[#allocation19_spill] sm:$0xff] %v7496_v15  ;;  %v7508_v19 = vpack.c.bf16 %v3706_v35, %v3703_v17  ;;  %v7510_v42 = vsub.f32 %v2991_v5, %v3706_v35  ;;  %v3149_v55 = vand.u32 4294901760, %v3148_v53  ;;  %v8027_v51 = vand.u32 4294901760, %v7324_v24 }
 0x348   :  { %5655 = vmatpush3.bf16.xpose.msra.mxu1 %v7456_v9  ;;  %v3783_v30 = vsub.f32 %v7317_v27, %v8024_v39  ;;  %v3790_v25 = vsub.f32 %v7319_v29, %v8025_v12  ;;  %v8031_v8 = vand.u32 4294901760, %v7344_v38  ;;  %v8032_v17 = vand.u32 4294901760, %v7356_v48 }
 0x349   :  { %8099 = vst [vmem:[#allocation14_spill] sm:$0xff] %v7508_v19  ;;  %5656 = vmatprep.subr.bf16.mxu1 %v8078_v6  ;;  %v7523_v5 = vpack.c.bf16 %v3149_v55, %v3142_v44  ;;  %v3155_v35 = vsub.f32 %v7324_v24, %v8027_v51  ;;  %v8033_v28 = vand.u32 4294901760, %v7360_v56  ;;  %v8036_v26 = vand.u32 4294901760, %v7363_v62 }
 0x34a   :  { %v3784_v53 = vand.u32 4294901760, %v3783_v30  ;;  %v3791_v39 = vand.u32 4294901760, %v3790_v25  ;;  %v3162_v12 = vsub.f32 %v7344_v38, %v8031_v8  ;;  %v3797_v43 = vsub.f32 %v7356_v48, %v8032_v17 }
 0x34b   :  { %v3156_v44 = vand.u32 4294901760, %v3155_v35  ;;  %v3804_v55 = vsub.f32 %v7360_v56, %v8033_v28  ;;  %v3169_v51 = vsub.f32 %v7363_v62, %v8036_v26  ;;  %v8037_v30 = vand.u32 4294901760, %v7367_v59 }
 0x34c   :  { %v7543_v25 = vpack.c.bf16 %v3791_v39, %v3784_v53  ;;  %v3163_v13 = vand.u32 4294901760, %v3162_v12  ;;  %v3798_v9 = vand.u32 4294901760, %v3797_v43  ;;  %v8038_v8 = vand.u32 4294901760, %v7390_v40  ;;  %5514 = vmatpush3.bf16.xpose.msra.mxu0 %v7496_v15 }
 0x34d   :  { %v3805_v17 = vand.u32 4294901760, %v3804_v55  ;;  %v3170_v35 = vand.u32 4294901760, %v3169_v51  ;;  %v3176_v28 = vsub.f32 %v7367_v59, %v8037_v30  ;;  %v8039_v4 = vand.u32 4294901760, %v7397_v54  ;;  %5515 = vmatprep.subr.bf16.mxu0 %v8078_v6 }
 0x34e   :  { %v7552_v26 = vpack.c.bf16 %v3163_v13, %v3156_v44  ;;  %v3811_v43 = vsub.f32 %v7390_v40, %v8038_v8  ;;  %v8044_v39 = vand.u32 4294901760, %v7406_v50  ;;  %v8045_v12 = vand.u32 4294901760, %v7408_v47 }
 0x34f   :  { %v7559_v53 = vpack.c.bf16 %v3805_v17, %v3798_v9  ;;  %v3177_v51 = vand.u32 4294901760, %v3176_v28  ;;  %v3818_v55 = vsub.f32 %v7397_v54, %v8039_v4  ;;  %v8050_v30 = vand.u32 4294901760, %v7411_v7 }
 0x350   :  { %5658 = vmatpush3.bf16.xpose.msra.mxu1 %v7508_v19  ;;  %v3812_v13 = vand.u32 4294901760, %v3811_v43  ;;  %v3183_v44 = vsub.f32 %v7406_v50, %v8044_v39  ;;  %v3190_v8 = vsub.f32 %v7408_v47, %v8045_v12  ;;  %v8051_v9 = vand.u32 4294901760, %v7423_v32 }
 0x351   :  { %5659 = vmatprep.subr.bf16.mxu1 %v8078_v6  ;;  %v7574_v17 = vpack.c.bf16 %v3177_v51, %v3170_v35  ;;  %v3819_v28 = vand.u32 4294901760, %v3818_v55  ;;  %v3825_v4 = vsub.f32 %v7411_v7, %v8050_v30  ;;  %v8054_v43 = vand.u32 4294901760, %v7436_v60  ;;  %v8100_v55 = vld [vmem:[#allocation9_spill] sm:$0xff] }
 0x352   :  { %v3184_v19 = vand.u32 4294901760, %v3183_v44  ;;  %v3191_v15 = vand.u32 4294901760, %v3190_v8  ;;  %v3832_v39 = vsub.f32 %v7423_v32, %v8051_v9  ;;  %v8052_v12 = vand.u32 4294901760, %v7438_v23 }
 0x353   :  { %v7584_v14 = vpack.c.bf16 %v3819_v28, %v3812_v13  ;;  %v3826_v57 = vand.u32 4294901760, %v3825_v4  ;;  %v3197_v35 = vsub.f32 %v7436_v60, %v8054_v43  ;;  %v8053_v51 = vand.u32 4294901760, %v7440_v3  ;;  %5104 = vmatmul.mubr.f32.vlgmr.msra.gmra.mrb[16].mxu0 %v8100_v55 }
 0x354   :  { %v7591_v30 = vpack.c.bf16 %v3191_v15, %v3184_v19  ;;  %v3833_v8 = vand.u32 4294901760, %v3832_v39  ;;  %v3204_v44 = vsub.f32 %v7438_v23, %v8052_v12  ;;  %v8059_v9 = vand.u32 4294901760, %v7458_v34  ;;  %5517 = vmatpush3.bf16.xpose.msra.mxu0 %v7477_v31  ;;  %v8102_v12 = vld [vmem:[#allocation12_spill] sm:$0xff] }
 0x355   :  { %v3198_v4 = vand.u32 4294901760, %v3197_v35  ;;  %v3839_v13 = vsub.f32 %v7440_v3, %v8053_v51  ;;  %v3210_v28 = vand.u32 4294901760, %v7443_v52  ;;  %v3217_v55 = vand.u32 4294901760, %v7498_v0  ;;  %5518 = vmatprep.subr.bf16.mxu0 %v8078_v6 }
 0x356   :  { %v8101_v15 = vmov 0.0   ;;  %v7606_v19 = vpack.c.bf16 %v3833_v8, %v3826_v57  ;;  %v3205_v39 = vand.u32 4294901760, %v3204_v44  ;;  %v3846_v31 = vsub.f32 %v7458_v34, %v8059_v9 }
 0x357   :  { %5138 = vmatprep.mubr.msk.f32.mxu0 %vm6122_vm4, %v8101_v15  ;;  %v3852_v35 = vand.u32 4294901760, %v7468_v63  ;;  %5314 = vmatmul.mubr.f32.vlgmr.msra.gmra.mrb[16].mxu1 %v8102_v12  ;;  %v3840_v51 = vand.u32 4294901760, %v3839_v13  ;;  %v3211_v43 = vsub.f32 %v7443_v52, %v3210_v28  ;;  %v3218_v33 = vsub.f32 %v7498_v0, %v3217_v55 }
 0x358   :  { %v3859_v2 = vand.u32 4294901760, %v7510_v42  ;;  %5661 = vmatpush3.bf16.xpose.msra.mxu1 %v7487_v41  ;;  %v7617_v57 = vpack.c.bf16 %v3205_v39, %v3198_v4  ;;  %v3847_v8 = vand.u32 4294901760, %v3846_v31  ;;  %5348 = vmatprep.mubr.msk.f32.mxu1 %vm6122_vm4, %v8101_v15  ;;  %v8110_v15 = vand.u32 4294901760, %v7234_v37 }
 0x359   :  { %v3853_v44 = vsub.f32 %v7468_v63, %v3852_v35  ;;  %5662 = vmatprep.subr.bf16.mxu1 %v8078_v6  ;;  %v3212_v12 = vand.u32 4294901760, %v3211_v43  ;;  %v3219_v13 = vand.u32 4294901760, %v3218_v33  ;;  %v8119_v39 = vand.u32 4294901760, %v7344_v38 }
 0x35a   :  { %v3860_v49 = vsub.f32 %v7510_v42, %v3859_v2  ;;  %v5678_v4 = vpack.c.bf16 %v3847_v8, %v3840_v51  ;;  %v8104_v8 = vand.u32 4294901760, %v7107_v11  ;;  %v8122_v41 = vand.u32 4294901760, %v7360_v56 }
 0x35b   :  { %v5537_v9 = vpack.c.bf16 %v3219_v13, %v3212_v12  ;;  %v3854_v36 = vand.u32 4294901760, %v3853_v44  ;;  %v8108_v13 = vand.u32 4294901760, %v8095_v20  ;;  %v8109_v12 = vand.u32 4294901760, %v7224_v18 }
 0x35c   :  { %v3861_v16 = vand.u32 4294901760, %v3860_v49  ;;  %5520 = vmatpush3.bf16.xpose.msra.mxu0 %v7490_v21  ;;  %v8103_v49 = vand.u32 4294901760, %v7105_v1  ;;  %v8107_v21 = vand.u32 4294901760, %v8093_v10 }
 0x35d   :  { %5521 = vmatprep.subr.bf16.mxu0 %v8078_v6 }
 0x35e   :  { %v5681_v43 = vpack.c.bf16 %v3861_v16, %v3854_v36  ;;  %v7662_v44 = vpack.c.bf16 %v8104_v8, %v8103_v49  ;;  %v8105_v16 = vand.u32 4294901760, %v7148_v58  ;;  %v8106_v36 = vand.u32 4294901760, %v7150_v61 }
 0x35f   :  { %v7675_v33 = vpack.c.bf16 %v8108_v13, %v8107_v21  ;;  %v7681_v8 = vpack.c.bf16 %v8110_v15, %v8109_v12  ;;  %v8113_v49 = vand.u32 4294901760, %v7289_v45  ;;  %v8118_v13 = vand.u32 4294901760, %v7324_v24 }
 0x360   :  { %5664 = vmatpush3.bf16.xpose.msra.mxu1 %v7504_v46  ;;  %v7669_v51 = vpack.c.bf16 %v8106_v36, %v8105_v16  ;;  %v8112_v46 = vand.u32 4294901760, %v7287_v22  ;;  %v8115_v16 = vand.u32 4294901760, %v7317_v27  ;;  %v8116_v36 = vand.u32 4294901760, %v7319_v29 }
 0x361   :  { %8111 = vst [vmem:[#allocation13_spill] sm:$0xff] %v7681_v8  ;;  %5665 = vmatprep.subr.bf16.mxu1 %v8078_v6  ;;  %v7700_v15 = vpack.c.bf16 %v8119_v39, %v8118_v13  ;;  %v8121_v12 = vand.u32 4294901760, %v7356_v48  ;;  %v8130_v39 = vand.u32 4294901760, %v7406_v50  ;;  %v8131_v13 = vand.u32 4294901760, %v7408_v47 }
 0x362   :  { %v7687_v31 = vpack.c.bf16 %v8113_v49, %v8112_v46  ;;  %v7694_v21 = vpack.c.bf16 %v8116_v36, %v8115_v16  ;;  %v8124_v49 = vand.u32 4294901760, %v7363_v62  ;;  %v8127_v16 = vand.u32 4294901760, %v7390_v40 }
 0x363   :  { %8120 = vst [vmem:[#allocation30_spill] sm:$0xff] %v7700_v15  ;;  %v7706_v46 = vpack.c.bf16 %v8122_v41, %v8121_v12  ;;  %v8128_v36 = vand.u32 4294901760, %v7397_v54  ;;  %v7724_v15 = vpack.c.bf16 %v8131_v13, %v8130_v39  ;;  %v8132_v41 = vand.u32 4294901760, %v7411_v7 }
 0x364   :  { %8114 = vst [vmem:[#allocation9_spill] sm:$0xff] %v7687_v31  ;;  %8117 = vst [vmem:[#allocation12_spill] sm:$0xff] %v7694_v21  ;;  %v8125_v31 = vand.u32 4294901760, %v7367_v59  ;;  %v8133_v12 = vand.u32 4294901760, %v7423_v32  ;;  %v7744_v39 = vpack.c.bf16 %v3217_v55, %v3210_v28  ;;  %v7746_v13 = vpack.c.bf16 %v3859_v2, %v3852_v35  ;;  %5523 = vmatpush3.bf16.xpose.msra.mxu0 %v7523_v5  ;;  %v8138_v2 = vld [vmem:[#allocation6_spill] sm:$0xff] }
 0x365   :  { %8123 = vst [vmem:[#allocation31_spill] sm:$0xff] %v7706_v46  ;;  %v7718_v21 = vpack.c.bf16 %v8128_v36, %v8127_v16  ;;  %v8136_v16 = vand.u32 4294901760, %v7440_v3  ;;  %v8137_v36 = vand.u32 4294901760, %v7458_v34  ;;  %5524 = vmatprep.subr.bf16.mxu0 %v8078_v6  ;;  %v8140_v5 = vmov 0.0  }
 0x366   :  { %v7712_v8 = vpack.c.bf16 %v8125_v31, %v8124_v49  ;;  %v7730_v46 = vpack.c.bf16 %v8133_v12, %v8132_v41  ;;  %v8134_v31 = vand.u32 4294901760, %v7436_v60  ;;  %v8135_v49 = vand.u32 4294901760, %v7438_v23 }
 0x367   :  { %8129 = vst [vmem:[#allocation33_spill] sm:$0xff] %v7718_v21  ;;  %v7742_v21 = vpack.c.bf16 %v8137_v36, %v8136_v16 }
 0x368   :  { %8126 = vst [vmem:[#allocation32_spill] sm:$0xff] %v7712_v8  ;;  %v7736_v8 = vpack.c.bf16 %v8135_v49, %v8134_v31  ;;  %5667 = vmatpush3.bf16.xpose.msra.mxu1 %v7543_v25  ;;  %v8175_v25 = vld [vmem:[#allocation8_spill] sm:$0xff]  ;;  %v8177_v28 = vld [vmem:[#allocation13_spill] sm:$0xff] }
 0x369   :  { %5668 = vmatprep.subr.bf16.mxu1 %v8078_v6 }
 0x36a   :  { %v8180_v35 = vld [vmem:[#allocation30_spill] sm:$0xff] }
 0x36b   :  { %v8178_v55 = vld [vmem:[#allocation9_spill] sm:$0xff] }
 0x36c   :  { %5526 = vmatpush3.bf16.xpose.msra.mxu0 %v7552_v26  ;;  %v8141_v26 = vld [vmem:[#allocation5_spill] sm:$0xff] }
 0x36d   :  { %5527 = vmatprep.subr.bf16.mxu0 %v8078_v6 }
 0x370   :  { %5670 = vmatpush3.bf16.xpose.msra.mxu1 %v7559_v53  ;;  %v8176_v53 = vld [vmem:[#allocation11_spill] sm:$0xff] }
 0x371   :  { %5671 = vmatprep.subr.bf16.mxu1 %v8078_v6 }
 0x374   :  { %5529 = vmatpush3.bf16.xpose.msra.mxu0 %v7574_v17 }
 0x375   :  { %5530 = vmatprep.subr.bf16.mxu0 %v8078_v6 }
 0x378   :  { %5673 = vmatpush3.bf16.xpose.msra.mxu1 %v7584_v14  ;;  %v8139_v14 = vpack.c.bf16 %v7107_v11, %v7105_v1  ;;  %v8143_v1 = vpack.c.bf16 %v8095_v20, %v8093_v10  ;;  %v8144_v11 = vpack.c.bf16 %v7234_v37, %v7224_v18  ;;  %v8147_v10 = vpack.c.bf16 %v7344_v38, %v7324_v24  ;;  %v8171_v20 = vld [vmem:[#allocation29_spill] sm:$0xff] }
 0x379   :  { %5674 = vmatprep.subr.bf16.mxu1 %v8078_v6  ;;  %v8148_v18 = vpack.c.bf16 %v7360_v56, %v7356_v48  ;;  %v8149_v37 = vpack.c.bf16 %v7367_v59, %v7363_v62  ;;  %v8154_v24 = vpack.c.bf16 %v7458_v34, %v7440_v3  ;;  %v8155_v38 = vpack.c.bf16 %v7498_v0, %v7443_v52  ;;  %v8157_v56 = vld [vmem:[#allocation7_spill] sm:$0xff]  ;;  %v8159_v59 = vld [vmem:[#allocation10_spill] sm:$0xff]  ;;  %v8170_v34 = vld [vmem:[#allocation28_spill] sm:$0xff] }
 0x37a   :  { %v8156_v48 = vpack.c.bf16 %v7510_v42, %v7468_v63  ;;  %v8158_v62 = vld [vmem:[#allocation15_spill] sm:$0xff]  ;;  %v8168_v3 = vld [vmem:[#allocation26_spill] sm:$0xff] }
 0x37b   :  { %v8169_v52 = vld [vmem:[#allocation27_spill] sm:$0xff]  ;;  %v8172_v63 = vld [vmem:[#allocation18_spill] sm:$0xff] }
 0x37c   :  { %5532 = vmatpush3.bf16.xpose.msra.mxu0 %v7591_v30  ;;  %v8142_v30 = vpack.c.bf16 %v7150_v61, %v7148_v58  ;;  %v8145_v58 = vpack.c.bf16 %v7289_v45, %v7287_v22  ;;  %v8146_v61 = vpack.c.bf16 %v7319_v29, %v7317_v27  ;;  %v8150_v22 = vpack.c.bf16 %v7397_v54, %v7390_v40  ;;  %v8160_v40 = vld [vmem:[#allocation16_spill] sm:$0xff]  ;;  %v8161_v54 = vld [vmem:[#allocation17_spill] sm:$0xff]  ;;  %v8173_v0 = vld [vmem:[#allocation19_spill] sm:$0xff] }
 0x37d   :  { %5533 = vmatprep.subr.bf16.mxu0 %v8078_v6  ;;  %v8151_v45 = vpack.c.bf16 %v7408_v47, %v7406_v50  ;;  %v8152_v27 = vpack.c.bf16 %v7423_v32, %v7411_v7  ;;  %v8153_v29 = vpack.c.bf16 %v7438_v23, %v7436_v60  ;;  %v8162_v50 = vld [vmem:[#allocation20_spill] sm:$0xff]  ;;  %v8163_v47 = vld [vmem:[#allocation21_spill] sm:$0xff]  ;;  %v8164_v7 = vld [vmem:[#allocation22_spill] sm:$0xff] }
 0x37e   :  { %v8165_v32 = vld [vmem:[#allocation23_spill] sm:$0xff]  ;;  %v8166_v60 = vld [vmem:[#allocation24_spill] sm:$0xff]  ;;  %v8167_v23 = vld [vmem:[#allocation25_spill] sm:$0xff] }
 0x37f   :  { %v8174_v42 = vld [vmem:[#allocation14_spill] sm:$0xff] }
 0x380   :  { %5676 = vmatpush3.bf16.xpose.msra.mxu1 %v7606_v19  ;;  %v8179_v19 = vld [vmem:[#allocation12_spill] sm:$0xff] }
 0x381   :  { %5677 = vmatprep.subr.bf16.mxu1 %v8078_v6 }
 0x384   :  { %5535 = vmatpush3.bf16.xpose.msra.mxu0 %v7617_v57  ;;  %v8181_v57 = vld [vmem:[#allocation31_spill] sm:$0xff] }
 0x385   :  { %5536 = vmatprep.subr.bf16.mxu0 %v8078_v6 }
 0x388   :  { %5679 = vmatpush3.bf16.xpose.msra.mxu1 %v5678_v4  ;;  %v8182_v4 = vld [vmem:[#allocation32_spill] sm:$0xff] }
 0x389   :  { %5680 = vmatprep.subr.bf16.mxu1 %v8078_v6 }
 0x38c   :  { %5538 = vmatpush3.bf16.xpose.msra.mxu0 %v5537_v9  ;;  %v6107_v9 = vld [vmem:[%s7978_s0] sm:$0xff] }
 0x38d   :  { %5539 = vmatprep.subr.bf16.mxu0 %v8078_v6  ;;  %v2992_v17 = vmul.f32 %v6107_v9, %v6107_v9 }
 0x38f   :  { %2993 = vadd.xlane.f32.xlu1 %v2992_v17 }
 0x390   :  { %5682 = vmatpush3.bf16.xpose.msra.mxu1 %v5681_v43  ;;  %v3004_v43 = vpop.xlane.xlu0 %3003 }
 0x391   :  { %5683 = vmatprep.subr.bf16.mxu1 %v8078_v6  ;;  %6098 = vrsqrt.f32 %v3004_v43  ;;  %vm3009_vm10 = vcmp.eq.f32.partialorder %v3004_v43, 0.0 }
 0x393   :  { %5139 = vmatmul.mubr.f32.vlgmr.msra.gmra.mrb[16].mxu0 %v8138_v2 }
 0x394   :  { %5541 = vmatpush3.bf16.xpose.msra.mxu0 %v8139_v14  ;;  %5173 = vmatprep.mubr.msk.f32.mxu0 %vm6122_vm4, %v8140_v5  ;;  %v4349_v14 = vld [vmem:[%s7984_s6] ss:$0 sm:$0xff] }
 0x395   :  { %5542 = vmatprep.subr.bf16.mxu0 %v8078_v6 }
 0x397   :  { %5349 = vmatmul.mubr.f32.vlgmr.msra.gmra.mrb[16].mxu1 %v8141_v26 }
 0x398   :  { %5685 = vmatpush3.bf16.xpose.msra.mxu1 %v8142_v30  ;;  %5383 = vmatprep.mubr.msk.f32.mxu1 %vm6122_vm4, %v8140_v5 }
 0x399   :  { %5686 = vmatprep.subr.bf16.mxu1 %v8078_v6 }
 0x39c   :  { %5544 = vmatpush3.bf16.xpose.msra.mxu0 %v8143_v1 }
 0x39d   :  { %5545 = vmatprep.subr.bf16.mxu0 %v8078_v6 }
 0x3a0   :  { %5688 = vmatpush3.bf16.xpose.msra.mxu1 %v8144_v11 }
 0x3a1   :  { %5689 = vmatprep.subr.bf16.mxu1 %v8078_v6 }
 0x3a4   :  { %5547 = vmatpush3.bf16.xpose.msra.mxu0 %v8145_v58 }
 0x3a5   :  { %5548 = vmatprep.subr.bf16.mxu0 %v8078_v6 }
 0x3a8   :  { %5691 = vmatpush3.bf16.xpose.msra.mxu1 %v8146_v61 }
 0x3a9   :  { %5692 = vmatprep.subr.bf16.mxu1 %v8078_v6 }
 0x3ac   :  { %5550 = vmatpush3.bf16.xpose.msra.mxu0 %v8147_v10 }
 0x3ad   :  { %5551 = vmatprep.subr.bf16.mxu0 %v8078_v6 }
 0x3b0   :  { %5694 = vmatpush3.bf16.xpose.msra.mxu1 %v8148_v18  ;;  %v4350_v18 = vld [vmem:[%s7985_s7] ss:$0 sm:$0xff] }
 0x3b1   :  { %5695 = vmatprep.subr.bf16.mxu1 %v8078_v6 }
 0x3b4   :  { %5553 = vmatpush3.bf16.xpose.msra.mxu0 %v8149_v37 }
 0x3b5   :  { %5554 = vmatprep.subr.bf16.mxu0 %v8078_v6 }
 0x3b8   :  { %5697 = vmatpush3.bf16.xpose.msra.mxu1 %v8150_v22 }
 0x3b9   :  { %5698 = vmatprep.subr.bf16.mxu1 %v8078_v6 }
 0x3bc   :  { %5556 = vmatpush3.bf16.xpose.msra.mxu0 %v8151_v45 }
 0x3bd   :  { %5557 = vmatprep.subr.bf16.mxu0 %v8078_v6 }
 0x3c0   :  { %5700 = vmatpush3.bf16.xpose.msra.mxu1 %v8152_v27 }
 0x3c1   :  { %5701 = vmatprep.subr.bf16.mxu1 %v8078_v6 }
 0x3c4   :  { %5559 = vmatpush3.bf16.xpose.msra.mxu0 %v8153_v29 }
 0x3c5   :  { %5560 = vmatprep.subr.bf16.mxu0 %v8078_v6 }
 0x3c8   :  { %5703 = vmatpush3.bf16.xpose.msra.mxu1 %v8154_v24  ;;  %v4322_v24 = vpop.xlane.xlu0 %4321 }
 0x3c9   :  { %5704 = vmatprep.subr.bf16.mxu1 %v8078_v6 }
 0x3cc   :  { %5562 = vmatpush3.bf16.xpose.msra.mxu0 %v8155_v38  ;;  %v4323_v38 = vrot.slane %v4322_v24, 4 }
 0x3cd   :  { %5563 = vmatprep.subr.bf16.mxu0 %v8078_v6 }
 0x3d0   :  { %5706 = vmatpush3.bf16.xpose.msra.mxu1 %v8156_v48  ;;  %v4324_v48 = vadd.f32 %v4323_v38, %v4322_v24 }
 0x3d1   :  { %5707 = vmatprep.subr.bf16.mxu1 %v8078_v6 }
 0x3d3   :  { %5174 = vmatmul.mubr.f32.vlgmr.msra.gmra.mrb[16].mxu0 %v8157_v56  ;;  %v4325_v56 = vrot.slane %v4324_v48, 2 }
 0x3d4   :  { %5565 = vmatpush3.bf16.xpose.msra.mxu0 %v8158_v62  ;;  %5208 = vmatprep.mubr.msk.f32.mxu0 %vm6122_vm4, %v8140_v5 }
 0x3d5   :  { %5566 = vmatprep.subr.bf16.mxu0 %v8078_v6 }
 0x3d7   :  { %5384 = vmatmul.mubr.f32.vlgmr.msra.gmra.mrb[16].mxu1 %v8159_v59 }
 0x3d8   :  { %5709 = vmatpush3.bf16.xpose.msra.mxu1 %v8160_v40  ;;  %5418 = vmatprep.mubr.msk.f32.mxu1 %vm6122_vm4, %v8140_v5 }
 0x3d9   :  { %5710 = vmatprep.subr.bf16.mxu1 %v8078_v6 }
 0x3dc   :  { %5568 = vmatpush3.bf16.xpose.msra.mxu0 %v8161_v54 }
 0x3dd   :  { %5569 = vmatprep.subr.bf16.mxu0 %v8078_v6 }
 0x3e0   :  { %5712 = vmatpush3.bf16.xpose.msra.mxu1 %v8162_v50 }
 0x3e1   :  { %5713 = vmatprep.subr.bf16.mxu1 %v8078_v6 }
 0x3e4   :  { %5571 = vmatpush3.bf16.xpose.msra.mxu0 %v8163_v47 }
 0x3e5   :  { %5572 = vmatprep.subr.bf16.mxu0 %v8078_v6 }
 0x3e8   :  { %5715 = vmatpush3.bf16.xpose.msra.mxu1 %v8164_v7 }
 0x3e9   :  { %5716 = vmatprep.subr.bf16.mxu1 %v8078_v6 }
 0x3ec   :  { %5574 = vmatpush3.bf16.xpose.msra.mxu0 %v8165_v32 }
 0x3ed   :  { %5575 = vmatprep.subr.bf16.mxu0 %v8078_v6 }
 0x3f0   :  { %5718 = vmatpush3.bf16.xpose.msra.mxu1 %v8166_v60 }
 0x3f1   :  { %5719 = vmatprep.subr.bf16.mxu1 %v8078_v6 }
 0x3f4   :  { %5577 = vmatpush3.bf16.xpose.msra.mxu0 %v8167_v23 }
 0x3f5   :  { %5578 = vmatprep.subr.bf16.mxu0 %v8078_v6 }
 0x3f8   :  { %5721 = vmatpush3.bf16.xpose.msra.mxu1 %v8168_v3 }
 0x3f9   :  { %5722 = vmatprep.subr.bf16.mxu1 %v8078_v6 }
 0x3fc   :  { %5580 = vmatpush3.bf16.xpose.msra.mxu0 %v8169_v52 }
 0x3fd   :  { %5581 = vmatprep.subr.bf16.mxu0 %v8078_v6 }
 0x400   :  { %5724 = vmatpush3.bf16.xpose.msra.mxu1 %v8170_v34 }
 0x401   :  { %5725 = vmatprep.subr.bf16.mxu1 %v8078_v6 }
 0x404   :  { %5583 = vmatpush3.bf16.xpose.msra.mxu0 %v8171_v20 }
 0x405   :  { %5584 = vmatprep.subr.bf16.mxu0 %v8078_v6 }
 0x408   :  { %5727 = vmatpush3.bf16.xpose.msra.mxu1 %v8172_v63 }
 0x409   :  { %5728 = vmatprep.subr.bf16.mxu1 %v8078_v6 }
 0x40c   :  { %5586 = vmatpush3.bf16.xpose.msra.mxu0 %v8173_v0 }
 0x40d   :  { %5587 = vmatprep.subr.bf16.mxu0 %v8078_v6 }
 0x410   :  { %5730 = vmatpush3.bf16.xpose.msra.mxu1 %v8174_v42 }
 0x411   :  { %5731 = vmatprep.subr.bf16.mxu1 %v8078_v6 }
 0x413   :  { %5209 = vmatmul.mubr.f32.vlgmr.msra.gmra.mrb[16].mxu0 %v8175_v25 }
 0x414   :  { %5589 = vmatpush3.bf16.xpose.msra.mxu0 %v7662_v44  ;;  %5243 = vmatprep.mubr.msk.f32.mxu0 %vm6122_vm4, %v8140_v5  ;;  %v6099_v44 = vpop.eup %6098 }
 0x415   :  { %5590 = vmatprep.subr.bf16.mxu0 %v8078_v6 }
 0x417   :  { %5419 = vmatmul.mubr.f32.vlgmr.msra.gmra.mrb[16].mxu1 %v8176_v53 }
 0x418   :  { %5733 = vmatpush3.bf16.xpose.msra.mxu1 %v7669_v51  ;;  %5453 = vmatprep.mubr.msk.f32.mxu1 %vm6122_vm4, %v8140_v5 }
 0x419   :  { %5734 = vmatprep.subr.bf16.mxu1 %v8078_v6 }
 0x41c   :  { %5592 = vmatpush3.bf16.xpose.msra.mxu0 %v7675_v33  ;;  %v8183_v33 = vld [vmem:[#allocation33_spill] sm:$0xff]  ;;  %v2994_v51 = vpop.xlane.xlu1 %2993 }
 0x41d   :  { %5593 = vmatprep.subr.bf16.mxu0 %v8078_v6  ;;  %6100 = vrsqrt.f32 %v2994_v51  ;;  %vm2997_vm9 = vcmp.eq.f32.partialorder %v2994_v51, inf  ;;  %v3000_v41 = vand.u32 2147483648, %v2994_v51  ;;  %vm2999_vm11 = vcmp.eq.f32.partialorder %v2994_v51, 0.0 }
 0x420   :  { %5736 = vmatpush3.bf16.xpose.msra.mxu1 %v8177_v28 }
 0x421   :  { %5737 = vmatprep.subr.bf16.mxu1 %v8078_v6 }
 0x424   :  { %5595 = vmatpush3.bf16.xpose.msra.mxu0 %v8178_v55 }
 0x425   :  { %5596 = vmatprep.subr.bf16.mxu0 %v8078_v6 }
 0x428   :  { %5739 = vmatpush3.bf16.xpose.msra.mxu1 %v8179_v19 }
 0x429   :  { %5740 = vmatprep.subr.bf16.mxu1 %v8078_v6 }
 0x42c   :  { %5598 = vmatpush3.bf16.xpose.msra.mxu0 %v8180_v35 }
 0x42d   :  { %5599 = vmatprep.subr.bf16.mxu0 %v8078_v6 }
 0x430   :  { %5742 = vmatpush3.bf16.xpose.msra.mxu1 %v8181_v57 }
 0x431   :  { %5743 = vmatprep.subr.bf16.mxu1 %v8078_v6 }
 0x434   :  { %5601 = vmatpush3.bf16.xpose.msra.mxu0 %v8182_v4 }
 0x435   :  { %5602 = vmatprep.subr.bf16.mxu0 %v8078_v6 }
 0x438   :  { %5745 = vmatpush3.bf16.xpose.msra.mxu1 %v8183_v33 }
 0x439   :  { %5746 = vmatprep.subr.bf16.mxu1 %v8078_v6 }
 0x43c   :  { %5604 = vmatpush3.bf16.xpose.msra.mxu0 %v7724_v15 }
 0x43d   :  { %5605 = vmatprep.subr.bf16.mxu0 %v8078_v6 }
 0x440   :  { %5748 = vmatpush3.bf16.xpose.msra.mxu1 %v7730_v46  ;;  %v3010_v46 = vand.u32 2147483648, %v3004_v43 }
 0x441   :  { %5749 = vmatprep.subr.bf16.mxu1 %v8078_v6 }
 0x444   :  { %5607 = vmatpush3.bf16.xpose.msra.mxu0 %v7736_v8  ;;  %v6101_v8 = vpop.eup %6100 }
 0x445   :  { %5608 = vmatprep.subr.bf16.mxu0 %v8078_v6  ;;  %v2996_v15 = vmul.f32 %v6101_v8, %v2994_v51 }
 0x447   :  { %v2998_v12 = vsel %vm2997_vm9, %v2994_v51, %v2996_v15 }
 0x448   :  { %5751 = vmatpush3.bf16.xpose.msra.mxu1 %v7742_v21  ;;  %v3006_v21 = vmul.f32 %v6099_v44, %v3004_v43  ;;  %v3001_v49 = vsel %vm2999_vm11, %v3000_v41, %v2998_v12 }
 0x449   :  { %5752 = vmatprep.subr.bf16.mxu1 %v8078_v6  ;;  %v3012_v36 = vmax.f32 %v3001_v49, 1e-08 }
 0x44c   :  { %5610 = vmatpush3.bf16.xpose.msra.mxu0 %v7744_v39  ;;  %v8184_v39 = vlaneseq }
 0x44d   :  { %5611 = vmatprep.subr.bf16.mxu0 %v8078_v6 }
 0x450   :  { %5754 = vmatpush3.bf16.xpose.msra.mxu1 %v7746_v13  ;;  %v323_v13 = vshrl.u32 %v8184_v39, 7 }
 0x451   :  { %5755 = vmatprep.subr.bf16.mxu1 %v8078_v6 }
 0x452   :  { %vm335_vm13 = vcmp.lt.s32.totalorder %v323_v13, %v4349_v14 }
 0x453   :  { %5244 = vmatmul.mubr.f32.vlgmr.msra.gmra.mrb[16].mxu0 %v8138_v2 }
 0x454   :  { %5613 = vmatpush3.bf16.xpose.msra.mxu0 %v8158_v62  ;;  %5278 = vmatprep.mubr.msk.f32.mxu0 %vm6122_vm4, %v8140_v5 }
 0x455   :  { %5614 = vmatprep.subr.bf16.mxu0 %v8078_v6 }
 0x457   :  { %5454 = vmatmul.mubr.f32.vlgmr.msra.gmra.mrb[16].mxu1 %v8141_v26 }
 0x458   :  { %5757 = vmatpush3.bf16.xpose.msra.mxu1 %v8160_v40  ;;  %5488 = vmatprep.mubr.msk.f32.mxu1 %vm6122_vm4, %v8140_v5  ;;  %vm3007_vm4 = vcmp.eq.f32.partialorder %v3004_v43, inf }
 0x459   :  { %5758 = vmatprep.subr.bf16.mxu1 %v8078_v6 }
 0x45c   :  { %5616 = vmatpush3.bf16.xpose.msra.mxu0 %v8161_v54  ;;  %v4326_v54 = vadd.f32 %v4325_v56, %v4324_v48 }
 0x45d   :  { %5617 = vmatprep.subr.bf16.mxu0 %v8078_v6 }
 0x460   :  { %5760 = vmatpush3.bf16.xpose.msra.mxu1 %v8162_v50 }
 0x461   :  { %5761 = vmatprep.subr.bf16.mxu1 %v8078_v6 }
 0x464   :  { %5619 = vmatpush3.bf16.xpose.msra.mxu0 %v8163_v47 }
 0x465   :  { %5620 = vmatprep.subr.bf16.mxu0 %v8078_v6 }
 0x468   :  { %5763 = vmatpush3.bf16.xpose.msra.mxu1 %v8164_v7  ;;  %v4327_v7 = vrot.slane %v4326_v54, 1 }
 0x469   :  { %5764 = vmatprep.subr.bf16.mxu1 %v8078_v6 }
 0x46c   :  { %5622 = vmatpush3.bf16.xpose.msra.mxu0 %v8165_v32 }
 0x46d   :  { %5623 = vmatprep.subr.bf16.mxu0 %v8078_v6 }
 0x470   :  { %5766 = vmatpush3.bf16.xpose.msra.mxu1 %v8166_v60 }
 0x471   :  { %5767 = vmatprep.subr.bf16.mxu1 %v8078_v6 }
 0x474   :  { %5625 = vmatpush3.bf16.xpose.msra.mxu0 %v8167_v23  ;;  %v4328_v23 = vadd.f32 %v4327_v7, %v4326_v54 }
 0x475   :  { %5626 = vmatprep.subr.bf16.mxu0 %v8078_v6 }
 0x478   :  { %5769 = vmatpush3.bf16.xpose.msra.mxu1 %v8168_v3 }
 0x479   :  { %5770 = vmatprep.subr.bf16.mxu1 %v8078_v6 }
 0x47c   :  { %5628 = vmatpush3.bf16.xpose.msra.mxu0 %v8169_v52 }
 0x47d   :  { %5629 = vmatprep.subr.bf16.mxu0 %v8078_v6 }
 0x480   :  { %5772 = vmatpush3.bf16.xpose.msra.mxu1 %v8170_v34 }
 0x481   :  { %5773 = vmatprep.subr.bf16.mxu1 %v8078_v6 }
 0x484   :  { %5631 = vmatpush3.bf16.xpose.msra.mxu0 %v8171_v20 }
 0x485   :  { %5632 = vmatprep.subr.bf16.mxu0 %v8078_v6 }
 0x488   :  { %5775 = vmatpush3.bf16.xpose.msra.mxu1 %v8172_v63 }
 0x489   :  { %5776 = vmatprep.subr.bf16.mxu1 %v8078_v6  ;;  %v3008_v6 = vsel %vm3007_vm4, %v3004_v43, %v3006_v21 }
 0x48a   :  { %v3011_v31 = vsel %vm3009_vm10, %v3010_v46, %v3008_v6 }
 0x48b   :  { %v3015_v16 = vmax.f32 %v3011_v31, 1e-08 }
 0x48c   :  { %5634 = vmatpush3.bf16.xpose.msra.mxu0 %v8173_v0 }
 0x48d   :  { %6102 = vrcp.f32 %v3015_v16 }
 0x48e   :  { %6104 = vrcp.f32 %v3012_v36 }
 0x490   :  { %5778 = vmatpush3.bf16.xpose.msra.mxu1 %v8174_v42 }
 0x493   :  { %5279 = vmatmul.mubr.f32.vlgmr.msra.gmra.mrb[16].mxu0 %v8138_v2  ;;  %v4348_v2 = vld [vmem:[%s7983_s5] ss:$0 sm:$0xff] }
 0x494   :  { %vm329_vm12 = vcmp.ge.s32.totalorder %v323_v13, %v4348_v2 }
 0x495   :  { %vm336_vm14 = vmand %vm329_vm12, %vm335_vm13 }
 0x496   :  { %v344_v45 = vsel %vm336_vm14, %v4350_v18, 0.0 }
 0x497   :  { %5489 = vmatmul.mubr.f32.vlgmr.msra.gmra.mrb[16].mxu1 %v8141_v26  ;;  %v6103_v26 = vpop.eup %6102 }
 0x498   :  { %v6105_v11 = vpop.eup %6104 }
 0x566   :  { %v3655_v5 = vpop.f32.mrb[16].mxu0 }
 0x567   :  { %v5280_v30 = vpop.f32.mrb[17].mxu0  ;;  %v3659_v1 = vmul.f32 %v6103_v26, %v3655_v5 }
 0x569   :  { %v4302_v37 = vsub.f32 1.0, %v3659_v1 }
 0x56a   :  { %v4297_v58 = vpop.f32.mrb[16].mxu1 }
 0x56b   :  { %v4301_v61 = vmul.f32 %v6105_v11, %v4297_v58  ;;  %v5490_v10 = vpop.f32.mrb[17].mxu1 }
 0x56d   :  { %v4303_v22 = vsub.f32 1.0, %v4301_v61 }
 0x56f   :  { %v4304_v27 = vadd.f32 %v4303_v22, %v4302_v37 }
 0x571   :  { %v4305_v29 = vmul.f32 %v4304_v27, %v344_v45 }
 0x573   :  { %4306 = vadd.xlane.f32.xlu1 %v4305_v29 }
 0x600   :  { %v4307_v62 = vpop.xlane.xlu1 %4306 }
 0x601   :  { %v4308_v59 = vrot.slane %v4307_v62, 4 }
 0x603   :  { %v4309_v40 = vadd.f32 %v4308_v59, %v4307_v62 }
 0x605   :  { %v4310_v50 = vrot.slane %v4309_v40, 2 }
 0x607   :  { %v4311_v47 = vadd.f32 %v4310_v50, %v4309_v40 }
 0x609   :  { %v4312_v32 = vrot.slane %v4311_v47, 1 }
 0x60b   :  { %v4313_v60 = vadd.f32 %v4312_v32, %v4311_v47 }
 0x60d   :  { %5959 = vpush %v4313_v60 }
 0x60e   :  { %5961 = vpush %v4328_v23 }
 0x63e   :  { %s5960_s5 = spop %5959 }
 0x63f   :  { %s5962_s6 = spop %5961 }
 0x640   :  { %s4330_s7 = ssub.f32 1.0, %s5962_s6 }
 0x642   :  { %s4331_s22 = sadd.f32 %s5960_s5, %s4330_s7 }
 0x644   :  { %s4332_s23 = smul.f32 0.5, %s4331_s22 }
 0x646   :  { %4334 = sst [smem:[#allocation2]] %s4332_s23 }
 0x647   :  { %6117 = shalt.err (!%p6114_p2)
}
 0x648   :  { %s6124_s9 = smov [#allocation2]  }
 0x649   :  { %4342 = dma.smem_to_hbm %s6124_s9, 16, %s7986_s8, [#allocation3]  }
 0x64a   :  { %6118 = dma.done.wait [#allocation3], 16  }
 0x64b   :  { %6119 = vsyncadd [#allocation3], 4294967280 }
 0x64c   :  { %4346 = sfence }
 0x64d   :  { %4347 = vsyncpa [#allocation3], 1 }

</bundles_post_ra>
